<compile_context>
chip_gen: v6e
topology: v6e:2x2x1
jax: 0.10.0
libtpu: 0.0.40
codegen_flags: <defaults>
</compile_context>

<pallas_src>
import functools

import jax
import jax.numpy as jnp
import numpy as np
from jax import lax
from jax.experimental import pallas as pl
from jax.experimental.pallas import tpu as pltpu


def kernel_to_pad(kernel_size):
    return (int((kernel_size[0] - 1) / 2), int((kernel_size[1] - 1) / 2))


def _make_fused_kernel(ks, hidden, H, W, slope=0.01):
    """Pallas body computing the full conv stack for one batch element."""
    KH, KW = ks
    ph, pw = kernel_to_pad(ks)
    Hp, Wp = H + 2 * ph, W + 2 * pw
    HpWp = Hp * Wp
    G = ph * Wp + pw                      # guard size = max |flattened shift|
    n_layers = len(hidden) - 1

    def kernel(*refs):
        mask_ref = refs[0]                # (1, HpWp): 1 inside image, 0 on pad ring
        x_ref = refs[1]                   # (1, Cin0, L): guard-padded flat input
        wb_refs = refs[2:2 + 2 * n_layers]
        o_ref = refs[2 + 2 * n_layers]    # (1, C_last, HpWp)
        scratch = refs[3 + 2 * n_layers]  # (C_scratch, L) f32 VMEM

        # Guard regions must stay zero; the [G:G+HpWp] window is fully
        # rewritten every layer, so one zero-fill per grid step suffices.
        scratch[...] = jnp.zeros_like(scratch)
        mask = mask_ref[...]

        for l in range(n_layers):
            cin, cout = hidden[l], hidden[l + 1]
            w_ref = wb_refs[2 * l]        # (KH*KW, cout, cin)
            b_ref = wb_refs[2 * l + 1]    # (cout, 1)
            # Bias folded into the accumulator init (lane broadcast).
            acc = jnp.broadcast_to(b_ref[...], (cout, HpWp)).astype(jnp.float32)
            # Direct conv as a sum over taps: each tap is one contiguous
            # lane-slice of the guard-padded flat activation + one MXU matmul.
            for kh in range(KH):
                for kw in range(KW):
                    start = G + (kh - ph) * Wp + (kw - pw)
                    if l == 0:
                        rhs = x_ref[0, :, start:start + HpWp]
                    else:
                        rhs = scratch[0:cin, start:start + HpWp]
                    acc = acc + jnp.dot(w_ref[kh * KW + kw], rhs,
                                        preferred_element_type=jnp.float32)
            if l != n_layers - 1:
                act = jnp.where(acc >= 0, acc, slope * acc)   # LeakyReLU(0.01)
                # Mask re-zeroes the padding ring so it acts as zero padding
                # for the next layer; garbage at border positions is discarded.
                scratch[0:cout, G:G + HpWp] = act * mask
            else:
                o_ref[0] = acc.astype(o_ref.dtype)            # lane-dense store

    return kernel


def _net_forward_impl(x_nchw, params, ks, hidden):
    N, C0, H, W = x_nchw.shape
    KH, KW = ks
    # TODO(synk): even kernel sizes (PyTorch pad=(k-1)//2 shrinks H/W) are not
    # supported by the fused same-size path; the demo/spec uses odd kernels.
    assert KH % 2 == 1 and KW % 2 == 1
    assert hidden[0] == C0 and len(params) == len(hidden) - 1
    ph, pw = kernel_to_pad(ks)
    Hp, Wp = H + 2 * ph, W + 2 * pw
    HpWp = Hp * Wp
    G = ph * Wp + pw
    L = HpWp + 2 * G
    n_layers = len(hidden) - 1
    C_last = hidden[-1]
    C_scratch = max(hidden[1:-1]) if n_layers > 1 else 1

    # Guard-padded flattened input: [zeros(G) | flat(zero-padded image) | zeros(G)]
    x_pad = jnp.pad(x_nchw, ((0, 0), (0, 0), (ph, ph), (pw, pw)))
    x_flat = jnp.pad(x_pad.reshape(N, C0, HpWp), ((0, 0), (0, 0), (G, G)))

    # Border mask (constant, built at trace time — no in-kernel div/mod).
    m2d = np.zeros((Hp, Wp), np.float32)
    m2d[ph:ph + H, pw:pw + W] = 1.0
    mask = jnp.asarray(m2d.reshape(1, HpWp))

    kernel = _make_fused_kernel(ks, hidden, H, W)

    inputs = [mask, x_flat]
    in_specs = [
        pl.BlockSpec((1, HpWp), lambda n: (0, 0)),
        pl.BlockSpec((1, C0, L), lambda n: (n, 0, 0)),
    ]
    for (w, b) in params:                      # w: OIHW (cout, cin, KH, KW)
        cout, cin = int(w.shape[0]), int(w.shape[1])
        wk = jnp.transpose(w, (2, 3, 0, 1)).reshape(KH * KW, cout, cin)
        bk = b.reshape(cout, 1)
        inputs.extend([wk, bk])
        in_specs.append(pl.BlockSpec((KH * KW, cout, cin), lambda n: (0, 0, 0)))
        in_specs.append(pl.BlockSpec((cout, 1), lambda n: (0, 0)))

    out_flat = pl.pallas_call(
        kernel,
        out_shape=jax.ShapeDtypeStruct((N, C_last, HpWp), x_nchw.dtype),
        grid=(N,),
        in_specs=in_specs,
        out_specs=pl.BlockSpec((1, C_last, HpWp), lambda n: (n, 0, 0)),
        scratch_shapes=[pltpu.VMEM((C_scratch, L), jnp.float32)],
        compiler_params=pltpu.CompilerParams(dimension_semantics=("parallel",)),
    )(*inputs)

    # Free reshape + slice back to NCHW (valid region of the padded grid).
    out = out_flat.reshape(N, C_last, Hp, Wp)[:, :, ph:ph + H, pw:pw + W]
    return out


@functools.partial(jax.jit, static_argnames=("ks", "hidden"))
def net_forward(x_nchw, msk, params, ks, hidden):
    """Forward pass of Net. NCHW in/out to match the PyTorch module."""
    del msk  # kernel_mul is False in the reference -> msk unused
    return _net_forward_impl(x_nchw, params, ks, hidden)


def init_net_params(key, ks, hidden, dtype=jnp.float32):
    """Deterministic Conv2d-style init; weights stored OIHW like PyTorch."""
    params = []
    for i in range(len(hidden) - 1):
        cin, cout = hidden[i], hidden[i + 1]
        key, kw_key, kb_key = jax.random.split(key, 3)
        fan_in = cin * ks[0] * ks[1]
        bound = 1.0 / np.sqrt(fan_in)
        w = jax.random.uniform(kw_key, (cout, cin, ks[0], ks[1]),
                               minval=-bound, maxval=bound, dtype=dtype)
        b = jax.random.uniform(kb_key, (cout,),
                               minval=-bound, maxval=bound, dtype=dtype)
        params.append((w, b))
    return tuple(params)


def net_forward_ref(x_nchw, params):
    """Pure-JAX reference (lax.conv) for correctness checking."""
    x = x_nchw
    n_layers = len(params)
    for i, (w, b) in enumerate(params):
        KH, KW = int(w.shape[2]), int(w.shape[3])
        ph, pw = kernel_to_pad((KH, KW))
        w_hwio = jnp.transpose(w, (2, 3, 1, 0))
        x = lax.conv_general_dilated(
            x, w_hwio, window_strides=(1, 1),
            padding=((ph, ph), (pw, pw)),
            dimension_numbers=("NCHW", "HWIO", "NCHW"))
        x = x + b.reshape(1, -1, 1, 1)
        if i != n_layers - 1:
            x = jnp.where(x >= 0, x, 0.01 * x)
    return x


if __name__ == "__main__":
    ks = (3, 3)
    hidden = (4, 8, 8, 4)          # Hidden = [in_ch, ..., out_ch]
    N, H, W = 2, 16, 16

    key = jax.random.PRNGKey(0)
    key, kx, km = jax.random.split(key, 3)
    x = jax.random.normal(kx, (N, hidden[0], H, W), dtype=jnp.float32)
    msk = jax.random.normal(km, (N, 1, H, W), dtype=jnp.float32)  # unused (kernel_mul=False)

    params = init_net_params(key, ks, hidden)

    out = net_forward(x, msk, params, ks, hidden)
    out = jax.block_until_ready(out)

    ref = net_forward_ref(x, params)
    np.testing.assert_allclose(np.asarray(out), np.asarray(ref),
                               rtol=1e-4, atol=1e-4)
    assert out.shape == (N, hidden[-1], H, W)

    print("KERNEL_OK")
</pallas_src>

<mosaic_0001>
module attributes {stable_mosaic.version = 11 : i64} {
  func.func @kernel(%arg0: i32, %arg1: memref<1x324xf32, #tpu.memory_space<vmem>>, %arg2: memref<1x4x362xf32, #tpu.memory_space<vmem>>, %arg3: memref<9x8x4xf32, #tpu.memory_space<vmem>>, %arg4: memref<8x1xf32, #tpu.memory_space<vmem>>, %arg5: memref<9x8x8xf32, #tpu.memory_space<vmem>>, %arg6: memref<8x1xf32, #tpu.memory_space<vmem>>, %arg7: memref<9x4x8xf32, #tpu.memory_space<vmem>>, %arg8: memref<4x1xf32, #tpu.memory_space<vmem>>, %arg9: memref<1x4x324xf32, #tpu.memory_space<vmem>>, %arg10: memref<8x362xf32, #tpu.memory_space<vmem>>) attributes {dimension_semantics = [#tpu.dimension_semantics<parallel>], iteration_bounds = array<i64: 2>, scalar_prefetch = 0 : i64, scratch_operands = 1 : i64, tpu.core_type = #tpu.core_type<tc>, window_params = [{pipeline_mode = #tpu.pipeline_mode<synchronous>, transform_indices = @transform_0, window_bounds = array<i64: 1, 324>}, {transform_indices = @transform_1, window_bounds = array<i64: 1, 4, 362>}, {pipeline_mode = #tpu.pipeline_mode<synchronous>, transform_indices = @transform_2, window_bounds = array<i64: 9, 8, 4>}, {pipeline_mode = #tpu.pipeline_mode<synchronous>, transform_indices = @transform_3, window_bounds = array<i64: 8, 1>}, {pipeline_mode = #tpu.pipeline_mode<synchronous>, transform_indices = @transform_4, window_bounds = array<i64: 9, 8, 8>}, {pipeline_mode = #tpu.pipeline_mode<synchronous>, transform_indices = @transform_5, window_bounds = array<i64: 8, 1>}, {pipeline_mode = #tpu.pipeline_mode<synchronous>, transform_indices = @transform_6, window_bounds = array<i64: 9, 4, 8>}, {pipeline_mode = #tpu.pipeline_mode<synchronous>, transform_indices = @transform_7, window_bounds = array<i64: 4, 1>}, {transform_indices = @transform_8, window_bounds = array<i64: 1, 4, 324>}]} {
    %cst = arith.constant 0.000000e+00 : f32
    %0 = vector.broadcast %cst : f32 to vector<8x362xf32>
    %c0 = arith.constant 0 : index
    %c0_0 = arith.constant 0 : index
    %1 = vector.load %arg10[%c0, %c0_0] : memref<8x362xf32, #tpu.memory_space<vmem>>, vector<8x362xf32>
    tpu.vector_store %arg10[%c0, %c0_0], %0 {strides = array<i32>} : memref<8x362xf32, #tpu.memory_space<vmem>>, vector<8x362xf32>,
    %c0_1 = arith.constant 0 : index
    %c0_2 = arith.constant 0 : index
    %2 = vector.load %arg1[%c0_1, %c0_2] : memref<1x324xf32, #tpu.memory_space<vmem>>, vector<1x324xf32>
    %c0_3 = arith.constant 0 : index
    %c0_4 = arith.constant 0 : index
    %3 = vector.load %arg4[%c0_3, %c0_4] : memref<8x1xf32, #tpu.memory_space<vmem>>, vector<8x1xf32>
    %4 = vector.shape_cast %3 : vector<8x1xf32> to vector<8x1xf32>
    %5 = vector.broadcast %4 : vector<8x1xf32> to vector<8x324xf32>
    %c0_5 = arith.constant 0 : index
    %c0_6 = arith.constant 0 : index
    %c0_7 = arith.constant 0 : index
    %6 = vector.load %arg2[%c0_5, %c0_6, %c0_7] : memref<1x4x362xf32, #tpu.memory_space<vmem>>, vector<1x4x324xf32>
    %7 = vector.shape_cast %6 : vector<1x4x324xf32> to vector<4x324xf32>
    %c0_8 = arith.constant 0 : index
    %c0_9 = arith.constant 0 : index
    %c0_10 = arith.constant 0 : index
    %8 = vector.load %arg3[%c0_8, %c0_9, %c0_10] : memref<9x8x4xf32, #tpu.memory_space<vmem>>, vector<1x8x4xf32>
    %9 = vector.shape_cast %8 : vector<1x8x4xf32> to vector<8x4xf32>
    %cst_11 = arith.constant dense<0.000000e+00> : vector<8x324xf32>
    %10 = tpu.matmul %9, %7, %cst_11 {dimension_numbers = #tpu.dot_dimension_numbers<[1], [0], [0], [1], [0, 0, 1, 1], [], []>} : vector<8x4xf32>, vector<4x324xf32>, vector<8x324xf32> -> vector<8x324xf32>
    %11 = arith.addf %5, %10 : vector<8x324xf32>
    %c0_12 = arith.constant 0 : index
    %c0_13 = arith.constant 0 : index
    %c1 = arith.constant 1 : index
    %12 = vector.load %arg2[%c0_12, %c0_13, %c1] : memref<1x4x362xf32, #tpu.memory_space<vmem>>, vector<1x4x324xf32>
    %13 = vector.shape_cast %12 : vector<1x4x324xf32> to vector<4x324xf32>
    %c1_14 = arith.constant 1 : index
    %c0_15 = arith.constant 0 : index
    %c0_16 = arith.constant 0 : index
    %14 = vector.load %arg3[%c1_14, %c0_15, %c0_16] : memref<9x8x4xf32, #tpu.memory_space<vmem>>, vector<1x8x4xf32>
    %15 = vector.shape_cast %14 : vector<1x8x4xf32> to vector<8x4xf32>
    %cst_17 = arith.constant dense<0.000000e+00> : vector<8x324xf32>
    %16 = tpu.matmul %15, %13, %cst_17 {dimension_numbers = #tpu.dot_dimension_numbers<[1], [0], [0], [1], [0, 0, 1, 1], [], []>} : vector<8x4xf32>, vector<4x324xf32>, vector<8x324xf32> -> vector<8x324xf32>
    %17 = arith.addf %11, %16 : vector<8x324xf32>
    %c0_18 = arith.constant 0 : index
    %c0_19 = arith.constant 0 : index
    %c2 = arith.constant 2 : index
    %18 = vector.load %arg2[%c0_18, %c0_19, %c2] : memref<1x4x362xf32, #tpu.memory_space<vmem>>, vector<1x4x324xf32>
    %19 = vector.shape_cast %18 : vector<1x4x324xf32> to vector<4x324xf32>
    %c2_20 = arith.constant 2 : index
    %c0_21 = arith.constant 0 : index
    %c0_22 = arith.constant 0 : index
    %20 = vector.load %arg3[%c2_20, %c0_21, %c0_22] : memref<9x8x4xf32, #tpu.memory_space<vmem>>, vector<1x8x4xf32>
    %21 = vector.shape_cast %20 : vector<1x8x4xf32> to vector<8x4xf32>
    %cst_23 = arith.constant dense<0.000000e+00> : vector<8x324xf32>
    %22 = tpu.matmul %21, %19, %cst_23 {dimension_numbers = #tpu.dot_dimension_numbers<[1], [0], [0], [1], [0, 0, 1, 1], [], []>} : vector<8x4xf32>, vector<4x324xf32>, vector<8x324xf32> -> vector<8x324xf32>
    %23 = arith.addf %17, %22 : vector<8x324xf32>
    %c0_24 = arith.constant 0 : index
    %c0_25 = arith.constant 0 : index
    %c18 = arith.constant 18 : index
    %24 = vector.load %arg2[%c0_24, %c0_25, %c18] : memref<1x4x362xf32, #tpu.memory_space<vmem>>, vector<1x4x324xf32>
    %25 = vector.shape_cast %24 : vector<1x4x324xf32> to vector<4x324xf32>
    %c3 = arith.constant 3 : index
    %c0_26 = arith.constant 0 : index
    %c0_27 = arith.constant 0 : index
    %26 = vector.load %arg3[%c3, %c0_26, %c0_27] : memref<9x8x4xf32, #tpu.memory_space<vmem>>, vector<1x8x4xf32>
    %27 = vector.shape_cast %26 : vector<1x8x4xf32> to vector<8x4xf32>
    %cst_28 = arith.constant dense<0.000000e+00> : vector<8x324xf32>
    %28 = tpu.matmul %27, %25, %cst_28 {dimension_numbers = #tpu.dot_dimension_numbers<[1], [0], [0], [1], [0, 0, 1, 1], [], []>} : vector<8x4xf32>, vector<4x324xf32>, vector<8x324xf32> -> vector<8x324xf32>
    %29 = arith.addf %23, %28 : vector<8x324xf32>
    %c0_29 = arith.constant 0 : index
    %c0_30 = arith.constant 0 : index
    %c19 = arith.constant 19 : index
    %30 = vector.load %arg2[%c0_29, %c0_30, %c19] : memref<1x4x362xf32, #tpu.memory_space<vmem>>, vector<1x4x324xf32>
    %31 = vector.shape_cast %30 : vector<1x4x324xf32> to vector<4x324xf32>
    %c4 = arith.constant 4 : index
    %c0_31 = arith.constant 0 : index
    %c0_32 = arith.constant 0 : index
    %32 = vector.load %arg3[%c4, %c0_31, %c0_32] : memref<9x8x4xf32, #tpu.memory_space<vmem>>, vector<1x8x4xf32>
    %33 = vector.shape_cast %32 : vector<1x8x4xf32> to vector<8x4xf32>
    %cst_33 = arith.constant dense<0.000000e+00> : vector<8x324xf32>
    %34 = tpu.matmul %33, %31, %cst_33 {dimension_numbers = #tpu.dot_dimension_numbers<[1], [0], [0], [1], [0, 0, 1, 1], [], []>} : vector<8x4xf32>, vector<4x324xf32>, vector<8x324xf32> -> vector<8x324xf32>
    %35 = arith.addf %29, %34 : vector<8x324xf32>
    %c0_34 = arith.constant 0 : index
    %c0_35 = arith.constant 0 : index
    %c20 = arith.constant 20 : index
    %36 = vector.load %arg2[%c0_34, %c0_35, %c20] : memref<1x4x362xf32, #tpu.memory_space<vmem>>, vector<1x4x324xf32>
    %37 = vector.shape_cast %36 : vector<1x4x324xf32> to vector<4x324xf32>
    %c5 = arith.constant 5 : index
    %c0_36 = arith.constant 0 : index
    %c0_37 = arith.constant 0 : index
    %38 = vector.load %arg3[%c5, %c0_36, %c0_37] : memref<9x8x4xf32, #tpu.memory_space<vmem>>, vector<1x8x4xf32>
    %39 = vector.shape_cast %38 : vector<1x8x4xf32> to vector<8x4xf32>
    %cst_38 = arith.constant dense<0.000000e+00> : vector<8x324xf32>
    %40 = tpu.matmul %39, %37, %cst_38 {dimension_numbers = #tpu.dot_dimension_numbers<[1], [0], [0], [1], [0, 0, 1, 1], [], []>} : vector<8x4xf32>, vector<4x324xf32>, vector<8x324xf32> -> vector<8x324xf32>
    %41 = arith.addf %35, %40 : vector<8x324xf32>
    %c0_39 = arith.constant 0 : index
    %c0_40 = arith.constant 0 : index
    %c36 = arith.constant 36 : index
    %42 = vector.load %arg2[%c0_39, %c0_40, %c36] : memref<1x4x362xf32, #tpu.memory_space<vmem>>, vector<1x4x324xf32>
    %43 = vector.shape_cast %42 : vector<1x4x324xf32> to vector<4x324xf32>
    %c6 = arith.constant 6 : index
    %c0_41 = arith.constant 0 : index
    %c0_42 = arith.constant 0 : index
    %44 = vector.load %arg3[%c6, %c0_41, %c0_42] : memref<9x8x4xf32, #tpu.memory_space<vmem>>, vector<1x8x4xf32>
    %45 = vector.shape_cast %44 : vector<1x8x4xf32> to vector<8x4xf32>
    %cst_43 = arith.constant dense<0.000000e+00> : vector<8x324xf32>
    %46 = tpu.matmul %45, %43, %cst_43 {dimension_numbers = #tpu.dot_dimension_numbers<[1], [0], [0], [1], [0, 0, 1, 1], [], []>} : vector<8x4xf32>, vector<4x324xf32>, vector<8x324xf32> -> vector<8x324xf32>
    %47 = arith.addf %41, %46 : vector<8x324xf32>
    %c0_44 = arith.constant 0 : index
    %c0_45 = arith.constant 0 : index
    %c37 = arith.constant 37 : index
    %48 = vector.load %arg2[%c0_44, %c0_45, %c37] : memref<1x4x362xf32, #tpu.memory_space<vmem>>, vector<1x4x324xf32>
    %49 = vector.shape_cast %48 : vector<1x4x324xf32> to vector<4x324xf32>
    %c7 = arith.constant 7 : index
    %c0_46 = arith.constant 0 : index
    %c0_47 = arith.constant 0 : index
    %50 = vector.load %arg3[%c7, %c0_46, %c0_47] : memref<9x8x4xf32, #tpu.memory_space<vmem>>, vector<1x8x4xf32>
    %51 = vector.shape_cast %50 : vector<1x8x4xf32> to vector<8x4xf32>
    %cst_48 = arith.constant dense<0.000000e+00> : vector<8x324xf32>
    %52 = tpu.matmul %51, %49, %cst_48 {dimension_numbers = #tpu.dot_dimension_numbers<[1], [0], [0], [1], [0, 0, 1, 1], [], []>} : vector<8x4xf32>, vector<4x324xf32>, vector<8x324xf32> -> vector<8x324xf32>
    %53 = arith.addf %47, %52 : vector<8x324xf32>
    %c0_49 = arith.constant 0 : index
    %c0_50 = arith.constant 0 : index
    %c38 = arith.constant 38 : index
    %54 = vector.load %arg2[%c0_49, %c0_50, %c38] : memref<1x4x362xf32, #tpu.memory_space<vmem>>, vector<1x4x324xf32>
    %55 = vector.shape_cast %54 : vector<1x4x324xf32> to vector<4x324xf32>
    %c8 = arith.constant 8 : index
    %c0_51 = arith.constant 0 : index
    %c0_52 = arith.constant 0 : index
    %56 = vector.load %arg3[%c8, %c0_51, %c0_52] : memref<9x8x4xf32, #tpu.memory_space<vmem>>, vector<1x8x4xf32>
    %57 = vector.shape_cast %56 : vector<1x8x4xf32> to vector<8x4xf32>
    %cst_53 = arith.constant dense<0.000000e+00> : vector<8x324xf32>
    %58 = tpu.matmul %57, %55, %cst_53 {dimension_numbers = #tpu.dot_dimension_numbers<[1], [0], [0], [1], [0, 0, 1, 1], [], []>} : vector<8x4xf32>, vector<4x324xf32>, vector<8x324xf32> -> vector<8x324xf32>
    %59 = arith.addf %53, %58 : vector<8x324xf32>
    %cst_54 = arith.constant 0.000000e+00 : f32
    %60 = vector.broadcast %cst_54 : f32 to vector<8x324xf32>
    %61 = arith.cmpf oge, %59, %60 : vector<8x324xf32>
    %cst_55 = arith.constant 0.00999999977 : f32
    %62 = vector.broadcast %cst_55 : f32 to vector<8x324xf32>
    %63 = arith.mulf %62, %59 : vector<8x324xf32>
    %64 = arith.select %61, %59, %63 : vector<8x324xi1>, vector<8x324xf32>
    %65 = vector.broadcast %2 : vector<1x324xf32> to vector<8x324xf32>
    %66 = arith.mulf %64, %65 : vector<8x324xf32>
    %c0_56 = arith.constant 0 : index
    %c19_57 = arith.constant 19 : index
    %67 = vector.load %arg10[%c0_56, %c19_57] : memref<8x362xf32, #tpu.memory_space<vmem>>, vector<8x324xf32>
    tpu.vector_store %arg10[%c0_56, %c19_57], %66 {strides = array<i32>} : memref<8x362xf32, #tpu.memory_space<vmem>>, vector<8x324xf32>,
    %c0_58 = arith.constant 0 : index
    %c0_59 = arith.constant 0 : index
    %68 = vector.load %arg6[%c0_58, %c0_59] : memref<8x1xf32, #tpu.memory_space<vmem>>, vector<8x1xf32>
    %69 = vector.shape_cast %68 : vector<8x1xf32> to vector<8x1xf32>
    %70 = vector.broadcast %69 : vector<8x1xf32> to vector<8x324xf32>
    %c0_60 = arith.constant 0 : index
    %c0_61 = arith.constant 0 : index
    %71 = vector.load %arg10[%c0_60, %c0_61] : memref<8x362xf32, #tpu.memory_space<vmem>>, vector<8x324xf32>
    %c0_62 = arith.constant 0 : index
    %c0_63 = arith.constant 0 : index
    %c0_64 = arith.constant 0 : index
    %72 = vector.load %arg5[%c0_62, %c0_63, %c0_64] : memref<9x8x8xf32, #tpu.memory_space<vmem>>, vector<1x8x8xf32>
    %73 = vector.shape_cast %72 : vector<1x8x8xf32> to vector<8x8xf32>
    %cst_65 = arith.constant dense<0.000000e+00> : vector<8x324xf32>
    %74 = tpu.matmul %73, %71, %cst_65 {dimension_numbers = #tpu.dot_dimension_numbers<[1], [0], [0], [1], [0, 0, 1, 1], [], []>} : vector<8x8xf32>, vector<8x324xf32>, vector<8x324xf32> -> vector<8x324xf32>
    %75 = arith.addf %70, %74 : vector<8x324xf32>
    %c0_66 = arith.constant 0 : index
    %c1_67 = arith.constant 1 : index
    %76 = vector.load %arg10[%c0_66, %c1_67] : memref<8x362xf32, #tpu.memory_space<vmem>>, vector<8x324xf32>
    %c1_68 = arith.constant 1 : index
    %c0_69 = arith.constant 0 : index
    %c0_70 = arith.constant 0 : index
    %77 = vector.load %arg5[%c1_68, %c0_69, %c0_70] : memref<9x8x8xf32, #tpu.memory_space<vmem>>, vector<1x8x8xf32>
    %78 = vector.shape_cast %77 : vector<1x8x8xf32> to vector<8x8xf32>
    %cst_71 = arith.constant dense<0.000000e+00> : vector<8x324xf32>
    %79 = tpu.matmul %78, %76, %cst_71 {dimension_numbers = #tpu.dot_dimension_numbers<[1], [0], [0], [1], [0, 0, 1, 1], [], []>} : vector<8x8xf32>, vector<8x324xf32>, vector<8x324xf32> -> vector<8x324xf32>
    %80 = arith.addf %75, %79 : vector<8x324xf32>
    %c0_72 = arith.constant 0 : index
    %c2_73 = arith.constant 2 : index
    %81 = vector.load %arg10[%c0_72, %c2_73] : memref<8x362xf32, #tpu.memory_space<vmem>>, vector<8x324xf32>
    %c2_74 = arith.constant 2 : index
    %c0_75 = arith.constant 0 : index
    %c0_76 = arith.constant 0 : index
    %82 = vector.load %arg5[%c2_74, %c0_75, %c0_76] : memref<9x8x8xf32, #tpu.memory_space<vmem>>, vector<1x8x8xf32>
    %83 = vector.shape_cast %82 : vector<1x8x8xf32> to vector<8x8xf32>
    %cst_77 = arith.constant dense<0.000000e+00> : vector<8x324xf32>
    %84 = tpu.matmul %83, %81, %cst_77 {dimension_numbers = #tpu.dot_dimension_numbers<[1], [0], [0], [1], [0, 0, 1, 1], [], []>} : vector<8x8xf32>, vector<8x324xf32>, vector<8x324xf32> -> vector<8x324xf32>
    %85 = arith.addf %80, %84 : vector<8x324xf32>
    %c0_78 = arith.constant 0 : index
    %c18_79 = arith.constant 18 : index
    %86 = vector.load %arg10[%c0_78, %c18_79] : memref<8x362xf32, #tpu.memory_space<vmem>>, vector<8x324xf32>
    %c3_80 = arith.constant 3 : index
    %c0_81 = arith.constant 0 : index
    %c0_82 = arith.constant 0 : index
    %87 = vector.load %arg5[%c3_80, %c0_81, %c0_82] : memref<9x8x8xf32, #tpu.memory_space<vmem>>, vector<1x8x8xf32>
    %88 = vector.shape_cast %87 : vector<1x8x8xf32> to vector<8x8xf32>
    %cst_83 = arith.constant dense<0.000000e+00> : vector<8x324xf32>
    %89 = tpu.matmul %88, %86, %cst_83 {dimension_numbers = #tpu.dot_dimension_numbers<[1], [0], [0], [1], [0, 0, 1, 1], [], []>} : vector<8x8xf32>, vector<8x324xf32>, vector<8x324xf32> -> vector<8x324xf32>
    %90 = arith.addf %85, %89 : vector<8x324xf32>
    %c0_84 = arith.constant 0 : index
    %c19_85 = arith.constant 19 : index
    %91 = vector.load %arg10[%c0_84, %c19_85] : memref<8x362xf32, #tpu.memory_space<vmem>>, vector<8x324xf32>
    %c4_86 = arith.constant 4 : index
    %c0_87 = arith.constant 0 : index
    %c0_88 = arith.constant 0 : index
    %92 = vector.load %arg5[%c4_86, %c0_87, %c0_88] : memref<9x8x8xf32, #tpu.memory_space<vmem>>, vector<1x8x8xf32>
    %93 = vector.shape_cast %92 : vector<1x8x8xf32> to vector<8x8xf32>
    %cst_89 = arith.constant dense<0.000000e+00> : vector<8x324xf32>
    %94 = tpu.matmul %93, %91, %cst_89 {dimension_numbers = #tpu.dot_dimension_numbers<[1], [0], [0], [1], [0, 0, 1, 1], [], []>} : vector<8x8xf32>, vector<8x324xf32>, vector<8x324xf32> -> vector<8x324xf32>
    %95 = arith.addf %90, %94 : vector<8x324xf32>
    %c0_90 = arith.constant 0 : index
    %c20_91 = arith.constant 20 : index
    %96 = vector.load %arg10[%c0_90, %c20_91] : memref<8x362xf32, #tpu.memory_space<vmem>>, vector<8x324xf32>
    %c5_92 = arith.constant 5 : index
    %c0_93 = arith.constant 0 : index
    %c0_94 = arith.constant 0 : index
    %97 = vector.load %arg5[%c5_92, %c0_93, %c0_94] : memref<9x8x8xf32, #tpu.memory_space<vmem>>, vector<1x8x8xf32>
    %98 = vector.shape_cast %97 : vector<1x8x8xf32> to vector<8x8xf32>
    %cst_95 = arith.constant dense<0.000000e+00> : vector<8x324xf32>
    %99 = tpu.matmul %98, %96, %cst_95 {dimension_numbers = #tpu.dot_dimension_numbers<[1], [0], [0], [1], [0, 0, 1, 1], [], []>} : vector<8x8xf32>, vector<8x324xf32>, vector<8x324xf32> -> vector<8x324xf32>
    %100 = arith.addf %95, %99 : vector<8x324xf32>
    %c0_96 = arith.constant 0 : index
    %c36_97 = arith.constant 36 : index
    %101 = vector.load %arg10[%c0_96, %c36_97] : memref<8x362xf32, #tpu.memory_space<vmem>>, vector<8x324xf32>
    %c6_98 = arith.constant 6 : index
    %c0_99 = arith.constant 0 : index
    %c0_100 = arith.constant 0 : index
    %102 = vector.load %arg5[%c6_98, %c0_99, %c0_100] : memref<9x8x8xf32, #tpu.memory_space<vmem>>, vector<1x8x8xf32>
    %103 = vector.shape_cast %102 : vector<1x8x8xf32> to vector<8x8xf32>
    %cst_101 = arith.constant dense<0.000000e+00> : vector<8x324xf32>
    %104 = tpu.matmul %103, %101, %cst_101 {dimension_numbers = #tpu.dot_dimension_numbers<[1], [0], [0], [1], [0, 0, 1, 1], [], []>} : vector<8x8xf32>, vector<8x324xf32>, vector<8x324xf32> -> vector<8x324xf32>
    %105 = arith.addf %100, %104 : vector<8x324xf32>
    %c0_102 = arith.constant 0 : index
    %c37_103 = arith.constant 37 : index
    %106 = vector.load %arg10[%c0_102, %c37_103] : memref<8x362xf32, #tpu.memory_space<vmem>>, vector<8x324xf32>
    %c7_104 = arith.constant 7 : index
    %c0_105 = arith.constant 0 : index
    %c0_106 = arith.constant 0 : index
    %107 = vector.load %arg5[%c7_104, %c0_105, %c0_106] : memref<9x8x8xf32, #tpu.memory_space<vmem>>, vector<1x8x8xf32>
    %108 = vector.shape_cast %107 : vector<1x8x8xf32> to vector<8x8xf32>
    %cst_107 = arith.constant dense<0.000000e+00> : vector<8x324xf32>
    %109 = tpu.matmul %108, %106, %cst_107 {dimension_numbers = #tpu.dot_dimension_numbers<[1], [0], [0], [1], [0, 0, 1, 1], [], []>} : vector<8x8xf32>, vector<8x324xf32>, vector<8x324xf32> -> vector<8x324xf32>
    %110 = arith.addf %105, %109 : vector<8x324xf32>
    %c0_108 = arith.constant 0 : index
    %c38_109 = arith.constant 38 : index
    %111 = vector.load %arg10[%c0_108, %c38_109] : memref<8x362xf32, #tpu.memory_space<vmem>>, vector<8x324xf32>
    %c8_110 = arith.constant 8 : index
    %c0_111 = arith.constant 0 : index
    %c0_112 = arith.constant 0 : index
    %112 = vector.load %arg5[%c8_110, %c0_111, %c0_112] : memref<9x8x8xf32, #tpu.memory_space<vmem>>, vector<1x8x8xf32>
    %113 = vector.shape_cast %112 : vector<1x8x8xf32> to vector<8x8xf32>
    %cst_113 = arith.constant dense<0.000000e+00> : vector<8x324xf32>
    %114 = tpu.matmul %113, %111, %cst_113 {dimension_numbers = #tpu.dot_dimension_numbers<[1], [0], [0], [1], [0, 0, 1, 1], [], []>} : vector<8x8xf32>, vector<8x324xf32>, vector<8x324xf32> -> vector<8x324xf32>
    %115 = arith.addf %110, %114 : vector<8x324xf32>
    %cst_114 = arith.constant 0.000000e+00 : f32
    %116 = vector.broadcast %cst_114 : f32 to vector<8x324xf32>
    %117 = arith.cmpf oge, %115, %116 : vector<8x324xf32>
    %cst_115 = arith.constant 0.00999999977 : f32
    %118 = vector.broadcast %cst_115 : f32 to vector<8x324xf32>
    %119 = arith.mulf %118, %115 : vector<8x324xf32>
    %120 = arith.select %117, %115, %119 : vector<8x324xi1>, vector<8x324xf32>
    %121 = vector.broadcast %2 : vector<1x324xf32> to vector<8x324xf32>
    %122 = arith.mulf %120, %121 : vector<8x324xf32>
    %c0_116 = arith.constant 0 : index
    %c19_117 = arith.constant 19 : index
    %123 = vector.load %arg10[%c0_116, %c19_117] : memref<8x362xf32, #tpu.memory_space<vmem>>, vector<8x324xf32>
    tpu.vector_store %arg10[%c0_116, %c19_117], %122 {strides = array<i32>} : memref<8x362xf32, #tpu.memory_space<vmem>>, vector<8x324xf32>,
    %c0_118 = arith.constant 0 : index
    %c0_119 = arith.constant 0 : index
    %124 = vector.load %arg8[%c0_118, %c0_119] : memref<4x1xf32, #tpu.memory_space<vmem>>, vector<4x1xf32>
    %125 = vector.shape_cast %124 : vector<4x1xf32> to vector<4x1xf32>
    %126 = vector.broadcast %125 : vector<4x1xf32> to vector<4x324xf32>
    %c0_120 = arith.constant 0 : index
    %c0_121 = arith.constant 0 : index
    %127 = vector.load %arg10[%c0_120, %c0_121] : memref<8x362xf32, #tpu.memory_space<vmem>>, vector<8x324xf32>
    %c0_122 = arith.constant 0 : index
    %c0_123 = arith.constant 0 : index
    %c0_124 = arith.constant 0 : index
    %128 = vector.load %arg7[%c0_122, %c0_123, %c0_124] : memref<9x4x8xf32, #tpu.memory_space<vmem>>, vector<1x4x8xf32>
    %129 = vector.shape_cast %128 : vector<1x4x8xf32> to vector<4x8xf32>
    %cst_125 = arith.constant dense<0.000000e+00> : vector<4x324xf32>
    %130 = tpu.matmul %129, %127, %cst_125 {dimension_numbers = #tpu.dot_dimension_numbers<[1], [0], [0], [1], [0, 0, 1, 1], [], []>} : vector<4x8xf32>, vector<8x324xf32>, vector<4x324xf32> -> vector<4x324xf32>
    %131 = arith.addf %126, %130 : vector<4x324xf32>
    %c0_126 = arith.constant 0 : index
    %c1_127 = arith.constant 1 : index
    %132 = vector.load %arg10[%c0_126, %c1_127] : memref<8x362xf32, #tpu.memory_space<vmem>>, vector<8x324xf32>
    %c1_128 = arith.constant 1 : index
    %c0_129 = arith.constant 0 : index
    %c0_130 = arith.constant 0 : index
    %133 = vector.load %arg7[%c1_128, %c0_129, %c0_130] : memref<9x4x8xf32, #tpu.memory_space<vmem>>, vector<1x4x8xf32>
    %134 = vector.shape_cast %133 : vector<1x4x8xf32> to vector<4x8xf32>
    %cst_131 = arith.constant dense<0.000000e+00> : vector<4x324xf32>
    %135 = tpu.matmul %134, %132, %cst_131 {dimension_numbers = #tpu.dot_dimension_numbers<[1], [0], [0], [1], [0, 0, 1, 1], [], []>} : vector<4x8xf32>, vector<8x324xf32>, vector<4x324xf32> -> vector<4x324xf32>
    %136 = arith.addf %131, %135 : vector<4x324xf32>
    %c0_132 = arith.constant 0 : index
    %c2_133 = arith.constant 2 : index
    %137 = vector.load %arg10[%c0_132, %c2_133] : memref<8x362xf32, #tpu.memory_space<vmem>>, vector<8x324xf32>
    %c2_134 = arith.constant 2 : index
    %c0_135 = arith.constant 0 : index
    %c0_136 = arith.constant 0 : index
    %138 = vector.load %arg7[%c2_134, %c0_135, %c0_136] : memref<9x4x8xf32, #tpu.memory_space<vmem>>, vector<1x4x8xf32>
    %139 = vector.shape_cast %138 : vector<1x4x8xf32> to vector<4x8xf32>
    %cst_137 = arith.constant dense<0.000000e+00> : vector<4x324xf32>
    %140 = tpu.matmul %139, %137, %cst_137 {dimension_numbers = #tpu.dot_dimension_numbers<[1], [0], [0], [1], [0, 0, 1, 1], [], []>} : vector<4x8xf32>, vector<8x324xf32>, vector<4x324xf32> -> vector<4x324xf32>
    %141 = arith.addf %136, %140 : vector<4x324xf32>
    %c0_138 = arith.constant 0 : index
    %c18_139 = arith.constant 18 : index
    %142 = vector.load %arg10[%c0_138, %c18_139] : memref<8x362xf32, #tpu.memory_space<vmem>>, vector<8x324xf32>
    %c3_140 = arith.constant 3 : index
    %c0_141 = arith.constant 0 : index
    %c0_142 = arith.constant 0 : index
    %143 = vector.load %arg7[%c3_140, %c0_141, %c0_142] : memref<9x4x8xf32, #tpu.memory_space<vmem>>, vector<1x4x8xf32>
    %144 = vector.shape_cast %143 : vector<1x4x8xf32> to vector<4x8xf32>
    %cst_143 = arith.constant dense<0.000000e+00> : vector<4x324xf32>
    %145 = tpu.matmul %144, %142, %cst_143 {dimension_numbers = #tpu.dot_dimension_numbers<[1], [0], [0], [1], [0, 0, 1, 1], [], []>} : vector<4x8xf32>, vector<8x324xf32>, vector<4x324xf32> -> vector<4x324xf32>
    %146 = arith.addf %141, %145 : vector<4x324xf32>
    %c0_144 = arith.constant 0 : index
    %c19_145 = arith.constant 19 : index
    %147 = vector.load %arg10[%c0_144, %c19_145] : memref<8x362xf32, #tpu.memory_space<vmem>>, vector<8x324xf32>
    %c4_146 = arith.constant 4 : index
    %c0_147 = arith.constant 0 : index
    %c0_148 = arith.constant 0 : index
    %148 = vector.load %arg7[%c4_146, %c0_147, %c0_148] : memref<9x4x8xf32, #tpu.memory_space<vmem>>, vector<1x4x8xf32>
    %149 = vector.shape_cast %148 : vector<1x4x8xf32> to vector<4x8xf32>
    %cst_149 = arith.constant dense<0.000000e+00> : vector<4x324xf32>
    %150 = tpu.matmul %149, %147, %cst_149 {dimension_numbers = #tpu.dot_dimension_numbers<[1], [0], [0], [1], [0, 0, 1, 1], [], []>} : vector<4x8xf32>, vector<8x324xf32>, vector<4x324xf32> -> vector<4x324xf32>
    %151 = arith.addf %146, %150 : vector<4x324xf32>
    %c0_150 = arith.constant 0 : index
    %c20_151 = arith.constant 20 : index
    %152 = vector.load %arg10[%c0_150, %c20_151] : memref<8x362xf32, #tpu.memory_space<vmem>>, vector<8x324xf32>
    %c5_152 = arith.constant 5 : index
    %c0_153 = arith.constant 0 : index
    %c0_154 = arith.constant 0 : index
    %153 = vector.load %arg7[%c5_152, %c0_153, %c0_154] : memref<9x4x8xf32, #tpu.memory_space<vmem>>, vector<1x4x8xf32>
    %154 = vector.shape_cast %153 : vector<1x4x8xf32> to vector<4x8xf32>
    %cst_155 = arith.constant dense<0.000000e+00> : vector<4x324xf32>
    %155 = tpu.matmul %154, %152, %cst_155 {dimension_numbers = #tpu.dot_dimension_numbers<[1], [0], [0], [1], [0, 0, 1, 1], [], []>} : vector<4x8xf32>, vector<8x324xf32>, vector<4x324xf32> -> vector<4x324xf32>
    %156 = arith.addf %151, %155 : vector<4x324xf32>
    %c0_156 = arith.constant 0 : index
    %c36_157 = arith.constant 36 : index
    %157 = vector.load %arg10[%c0_156, %c36_157] : memref<8x362xf32, #tpu.memory_space<vmem>>, vector<8x324xf32>
    %c6_158 = arith.constant 6 : index
    %c0_159 = arith.constant 0 : index
    %c0_160 = arith.constant 0 : index
    %158 = vector.load %arg7[%c6_158, %c0_159, %c0_160] : memref<9x4x8xf32, #tpu.memory_space<vmem>>, vector<1x4x8xf32>
    %159 = vector.shape_cast %158 : vector<1x4x8xf32> to vector<4x8xf32>
    %cst_161 = arith.constant dense<0.000000e+00> : vector<4x324xf32>
    %160 = tpu.matmul %159, %157, %cst_161 {dimension_numbers = #tpu.dot_dimension_numbers<[1], [0], [0], [1], [0, 0, 1, 1], [], []>} : vector<4x8xf32>, vector<8x324xf32>, vector<4x324xf32> -> vector<4x324xf32>
    %161 = arith.addf %156, %160 : vector<4x324xf32>
    %c0_162 = arith.constant 0 : index
    %c37_163 = arith.constant 37 : index
    %162 = vector.load %arg10[%c0_162, %c37_163] : memref<8x362xf32, #tpu.memory_space<vmem>>, vector<8x324xf32>
    %c7_164 = arith.constant 7 : index
    %c0_165 = arith.constant 0 : index
    %c0_166 = arith.constant 0 : index
    %163 = vector.load %arg7[%c7_164, %c0_165, %c0_166] : memref<9x4x8xf32, #tpu.memory_space<vmem>>, vector<1x4x8xf32>
    %164 = vector.shape_cast %163 : vector<1x4x8xf32> to vector<4x8xf32>
    %cst_167 = arith.constant dense<0.000000e+00> : vector<4x324xf32>
    %165 = tpu.matmul %164, %162, %cst_167 {dimension_numbers = #tpu.dot_dimension_numbers<[1], [0], [0], [1], [0, 0, 1, 1], [], []>} : vector<4x8xf32>, vector<8x324xf32>, vector<4x324xf32> -> vector<4x324xf32>
    %166 = arith.addf %161, %165 : vector<4x324xf32>
    %c0_168 = arith.constant 0 : index
    %c38_169 = arith.constant 38 : index
    %167 = vector.load %arg10[%c0_168, %c38_169] : memref<8x362xf32, #tpu.memory_space<vmem>>, vector<8x324xf32>
    %c8_170 = arith.constant 8 : index
    %c0_171 = arith.constant 0 : index
    %c0_172 = arith.constant 0 : index
    %168 = vector.load %arg7[%c8_170, %c0_171, %c0_172] : memref<9x4x8xf32, #tpu.memory_space<vmem>>, vector<1x4x8xf32>
    %169 = vector.shape_cast %168 : vector<1x4x8xf32> to vector<4x8xf32>
    %cst_173 = arith.constant dense<0.000000e+00> : vector<4x324xf32>
    %170 = tpu.matmul %169, %167, %cst_173 {dimension_numbers = #tpu.dot_dimension_numbers<[1], [0], [0], [1], [0, 0, 1, 1], [], []>} : vector<4x8xf32>, vector<8x324xf32>, vector<4x324xf32> -> vector<4x324xf32>
    %171 = arith.addf %166, %170 : vector<4x324xf32>
    %c0_174 = arith.constant 0 : index
    %c0_175 = arith.constant 0 : index
    %c0_176 = arith.constant 0 : index
    %172 = vector.load %arg9[%c0_174, %c0_175, %c0_176] : memref<1x4x324xf32, #tpu.memory_space<vmem>>, vector<1x4x324xf32>
    %173 = vector.shape_cast %172 : vector<1x4x324xf32> to vector<4x324xf32>
    %174 = vector.shape_cast %171 : vector<4x324xf32> to vector<1x4x324xf32>
    tpu.vector_store %arg9[%c0_174, %c0_175, %c0_176], %174 {strides = array<i32>} : memref<1x4x324xf32, #tpu.memory_space<vmem>>, vector<1x4x324xf32>,
    return
  }
  func.func @transform_0(%arg0: i32) -> (i32, i32) {
    %c0_i32 = arith.constant 0 : i32
    %c0_i32_0 = arith.constant 0 : i32
    %c0_i32_1 = arith.constant 0 : i32
    return %c0_i32, %c0_i32_0 : i32, i32
  }
  func.func @transform_1(%arg0: i32) -> (i32, i32, i32) {
    %c0_i32 = arith.constant 0 : i32
    %c0_i32_0 = arith.constant 0 : i32
    %c0_i32_1 = arith.constant 0 : i32
    return %arg0, %c0_i32, %c0_i32_0 : i32, i32, i32
  }
  func.func @transform_2(%arg0: i32) -> (i32, i32, i32) {
    %c0_i32 = arith.constant 0 : i32
    %c0_i32_0 = arith.constant 0 : i32
    %c0_i32_1 = arith.constant 0 : i32
    %c0_i32_2 = arith.constant 0 : i32
    return %c0_i32, %c0_i32_0, %c0_i32_1 : i32, i32, i32
  }
  func.func @transform_3(%arg0: i32) -> (i32, i32) {
    %c0_i32 = arith.constant 0 : i32
    %c0_i32_0 = arith.constant 0 : i32
    %c0_i32_1 = arith.constant 0 : i32
    return %c0_i32, %c0_i32_0 : i32, i32
  }
  func.func @transform_4(%arg0: i32) -> (i32, i32, i32) {
    %c0_i32 = arith.constant 0 : i32
    %c0_i32_0 = arith.constant 0 : i32
    %c0_i32_1 = arith.constant 0 : i32
    %c0_i32_2 = arith.constant 0 : i32
    return %c0_i32, %c0_i32_0, %c0_i32_1 : i32, i32, i32
  }
  func.func @transform_5(%arg0: i32) -> (i32, i32) {
    %c0_i32 = arith.constant 0 : i32
    %c0_i32_0 = arith.constant 0 : i32
    %c0_i32_1 = arith.constant 0 : i32
    return %c0_i32, %c0_i32_0 : i32, i32
  }
  func.func @transform_6(%arg0: i32) -> (i32, i32, i32) {
    %c0_i32 = arith.constant 0 : i32
    %c0_i32_0 = arith.constant 0 : i32
    %c0_i32_1 = arith.constant 0 : i32
    %c0_i32_2 = arith.constant 0 : i32
    return %c0_i32, %c0_i32_0, %c0_i32_1 : i32, i32, i32
  }
  func.func @transform_7(%arg0: i32) -> (i32, i32) {
    %c0_i32 = arith.constant 0 : i32
    %c0_i32_0 = arith.constant 0 : i32
    %c0_i32_1 = arith.constant 0 : i32
    return %c0_i32, %c0_i32_0 : i32, i32
  }
  func.func @transform_8(%arg0: i32) -> (i32, i32, i32) {
    %c0_i32 = arith.constant 0 : i32
    %c0_i32_0 = arith.constant 0 : i32
    %c0_i32_1 = arith.constant 0 : i32
    return %arg0, %c0_i32, %c0_i32_0 : i32, i32, i32
  }
}

</mosaic_0001>

<bundles_post_ra>
// kernel: net_forward.1
= control target key start
LH: loop header
LB: loop body
LE: loop exit
PB: predicated region body
PF: predicated region fallthrough
CT: control target
= control target key end

     0   :  { %s5242_s27 = smov 0   ;;  %s5720_s0 = inlined_call_operand.vmem [shape: f32[1,324], index: 0, kind: input, shape index: {}]   ;;  %s5721_s1 = inlined_call_operand.vmem [shape: f32[2,4,362], index: 1, kind: input, shape index: {}]   ;;  %s5722_s2 = inlined_call_operand.vmem [shape: f32[9,8,4], index: 2, kind: input, shape index: {}]   ;;  %s5723_s3 = inlined_call_operand.vmem [shape: f32[8,1], index: 3, kind: input, shape index: {}]   ;;  %s5724_s4 = inlined_call_operand.vmem [shape: f32[9,8,8], index: 4, kind: input, shape index: {}]   ;;  %s5725_s5 = inlined_call_operand.vmem [shape: f32[8,1], index: 5, kind: input, shape index: {}]   ;;  %s5726_s6 = inlined_call_operand.vmem [shape: f32[9,4,8], index: 6, kind: input, shape index: {}]   ;;  %s5727_s7 = inlined_call_operand.vmem [shape: f32[4,1], index: 7, kind: input, shape index: {}]   ;;  %s5728_s8 = inlined_call_operand.vmem [shape: f32[2,4,324], index: 8, kind: output, shape index: {}]  }
   0x1 LB: > { %s4850_s28 = sadd.s32 4294967295, %s5183_s27   ;;  %p4854_p0 = scmp.ge.s32.totalorder %s5183_s27, 1  ;;  %s5183_s27 = sphi %s5242_s27, %s18_s27  }
   0x2   : > { %p262_p1 = scmp.lt.s32.totalorder %s5183_s27, 3 }
   0x4   : > { %p263_p2 = pnand %p4854_p0, %p262_p1 }
   0x5   : > { %p296_p3 = scmp.lt.s32.totalorder (!%p263_p2), %s4850_s28, 1  ;;  %s5187_s11 = smov (!%p263_p2), 127  }
   0x6   : > { %266 = sbr.rel (%p263_p2) target bundleno = 1348 (0x544), region = 52  ;;  %s5188_s14 = smov (!%p263_p2), 126  }
   0x7   : > { %s5189_s15 = smov (!%p263_p2), 110   ;;  %s5190_s16 = smov (!%p263_p2), 109  }
   0x8   : > { %s5191_s17 = smov (!%p263_p2), 108   ;;  %s5192_s18 = smov (!%p263_p2), 92  }
   0x9   : > { %s5194_s19 = smov (!%p263_p2), 91   ;;  %s5195_s20 = smov (!%p263_p2), 90  }
   0xa   : > { %s5196_s12 = smov (!%p263_p2), 19  }
   0xb   : > { %v5185_v0 = vmov 0.0   ;;  %vm5186_vm0 = vmmov 0   ;;  %s5730_s28 = smov (!%p296_p3, %s4850_s28), 1  ;;  %vm327_vm1 = vcmask 1043456   ;;  %v319_v6 = vld [vmem:[%s5722_s2] sm:$0xff]  ;;  %vm323_vm2 = vcmask 31744  }
   0xc   : > { %5018 = vmatprep.subr.mxu1 %v5185_v0  ;;  %306 = vst [vmem:[#allocation2] sm:$0xff] %v5185_v0  ;;  %5020 = vmatprep.mubr.msk.f32.mxu1 %vm5186_vm0, %v5185_v0  ;;  %s5153_s29 = smul.u32 12, %s5730_s28  ;;  %v5193_v12 = vmov 0   ;;  %v311_v14 = vld [vmem:[%s5723_s3] sm:$0xff]  ;;  %v4862_v15 = vld [vmem:[%s5722_s2 + $0x8] sm:$0xff]  ;;  %v4868_v18 = vld [vmem:[%s5722_s2 + $0x10] sm:$0xff] }
   0xd   : > { %398 = vmatprep.mubr.f32.mxu0 %v5185_v0  ;;  %5174 = vset.pattern.permute.xlu0 %v5193_v12  ;;  %vm491_vm3 = vcmask 1039360   ;;  %vm660_vm4 = vcmask 1031168   ;;  %vm829_vm5 = vcmask 900096   ;;  %v4874_v29 = vld [vmem:[%s5722_s2 + $0x18] sm:$0xff]  ;;  %vm998_vm6 = vcmask 891904   ;;  %v4880_v38 = vld [vmem:[%s5722_s2 + $0x20] sm:$0xff] }
   0xe   : > { %s5263_s10 = scalar_lea.vmem %s5721_s1, %s5153_s29  ;;  %5175 = vset.pattern.permute.xlu1 %v5193_v12  ;;  %vm1167_vm7 = vcmask 883712   ;;  %v4886_v42 = vld [vmem:[%s5722_s2 + $0x28] sm:$0xff]  ;;  %vm1336_vm8 = vcmask 752640   ;;  %v4892_v50 = vld [vmem:[%s5722_s2 + $0x30] sm:$0xff]  ;;  %vm1505_vm9 = vcmask 744448   ;;  %v4898_v53 = vld [vmem:[%s5722_s2 + $0x38] sm:$0xff] }
   0xf   : > { %v479_v1 = vld [vmem:[%s5263_s10 + $0x8] sm:$0xf]  ;;  %v478_v2 = vld [vmem:[%s5263_s10] sm:$0xff]  ;;  %vm1674_vm10 = vcmask 736256   ;;  %vm308_vm11 = vcmask 867328   ;;  %vm1873_vm15 = vcmask 1047704  }
  0x10   : > { %489 = vrot.lane.b32.xlu0 %v479_v1, %s5187_s11  ;;  %485 = vrot.lane.b32.xlu1 %v478_v2, %s5187_s11  ;;  %v484_v3 = vcombine.high %v478_v2, %v478_v2  ;;  %v648_v4 = vld [vmem:[%s5263_s10 + $0x8] sm:$0xf]  ;;  %v4904_v58 = vld [vmem:[%s5722_s2 + $0x40] sm:$0xff]  ;;  %309 = vst.msk [vmem:[#allocation2 + $0x10] sm:$0xff] %vm308_vm11, %v5185_v0  ;;  %vm1888_vm11 = vcmask 64512  }
  0x11   : > { %v318_v5 = vld [vmem:[%s5263_s10 + $0x8] sm:$0xf] }
  0x12   : > { %4857 = vmatprep.subr.msk.mxu0 %vm327_vm1, %v484_v3  ;;  %5019 = vmatpush3.msk.msra.mxu1 %vm327_vm1, %v318_v5  ;;  %v817_v7 = vld [vmem:[%s5263_s10 + $0x8] sm:$0xf] }
  0x13   : > { %4858 = vmatpush1.msk.msra.mxu0 %vm327_vm1, %v478_v2  ;;  %5023 = vmatprep.subr.mxu1 %v5185_v0  ;;  %v986_v8 = vld [vmem:[%s5263_s10 + $0x8] sm:$0xf] }
  0x14   : > { %658 = vrot.lane.b32.xlu0 %v648_v4, %s5188_s14  ;;  %654 = vrot.lane.b32.xlu1 %v478_v2, %s5188_s14  ;;  %v1155_v9 = vld [vmem:[%s5263_s10 + $0x8] sm:$0xf] }
  0x15   : > { %5021 = vmatmul.mubr.msk.f32.vlgmr.msra.gmra.mxu1 %vm323_vm2, %v319_v6  ;;  %4859 = vmatmul.mubr.msk.f32.vlgmr.msra.gmra.mxu0 %vm323_vm2, %v319_v6  ;;  %v1324_v10 = vld [vmem:[%s5263_s10 + $0x8] sm:$0xf] }
  0x16   : > { %5025 = vmatprep.mubr.msk.f32.mxu1 %vm5186_vm0, %v5185_v0  ;;  %567 = vmatprep.mubr.f32.mxu0 %v5185_v0  ;;  %v1493_v11 = vld [vmem:[%s5263_s10 + $0x8] sm:$0xf] }
  0x17   : > { %v1662_v13 = vld [vmem:[%s5263_s10 + $0x8] sm:$0xf] }
  0x18   : > { %656 = vrot.lane.b32.xlu1 %v484_v3, %s5188_s14  ;;  %487 = vrot.lane.b32.xlu0 %v484_v3, %s5187_s11 }
  0x1c   : > { %827 = vrot.lane.b32.xlu1 %v817_v7, %s5189_s15  ;;  %825 = vrot.lane.b32.xlu0 %v484_v3, %s5189_s15 }
  0x20   : > { %994 = vrot.lane.b32.xlu1 %v484_v3, %s5190_s16  ;;  %823 = vrot.lane.b32.xlu0 %v478_v2, %s5189_s15 }
  0x24   : > { %992 = vrot.lane.b32.xlu1 %v478_v2, %s5190_s16  ;;  %996 = vrot.lane.b32.xlu0 %v986_v8, %s5190_s16 }
  0x28   : > { %1165 = vrot.lane.b32.xlu1 %v1155_v9, %s5191_s17  ;;  %1163 = vrot.lane.b32.xlu0 %v484_v3, %s5191_s17 }
  0x2c   : > { %1332 = vrot.lane.b32.xlu1 %v484_v3, %s5192_s18  ;;  %1161 = vrot.lane.b32.xlu0 %v478_v2, %s5191_s17 }
  0x30   : > { %1330 = vrot.lane.b32.xlu1 %v478_v2, %s5192_s18  ;;  %1334 = vrot.lane.b32.xlu0 %v1324_v10, %s5192_s18 }
  0x34   : > { %1503 = vrot.lane.b32.xlu1 %v1493_v11, %s5194_s19  ;;  %1501 = vrot.lane.b32.xlu0 %v484_v3, %s5194_s19 }
  0x38   : > { %1670 = vrot.lane.b32.xlu1 %v484_v3, %s5195_s20  ;;  %1499 = vrot.lane.b32.xlu0 %v478_v2, %s5194_s19 }
  0x3c   : > { %1668 = vrot.lane.b32.xlu1 %v478_v2, %s5195_s20  ;;  %1672 = vrot.lane.b32.xlu0 %v1662_v13, %s5195_s20 }
  0x40   : > { %314 = vperm.xlu0 %5174, %v311_v14  }
  0x82   : > { %v490_v16 = vpop.permute.xlu0 %489  ;;  %v486_v17 = vpop.permute.xlu1 %485 }
  0x83   : > { %5024 = vmatpush3.msk.msra.mxu1 %vm327_vm1, %v490_v16 }
  0x84   : > { %5028 = vmatprep.subr.mxu1 %v5185_v0  ;;  %5026 = vmatmul.mubr.msk.f32.vlgmr.msra.gmra.mxu1 %vm323_vm2, %v4862_v15 }
  0x85   : > { %5030 = vmatprep.mubr.msk.f32.mxu1 %vm5186_vm0, %v5185_v0 }
  0x86   : > { %v659_v19 = vpop.permute.xlu0 %658  ;;  %v655_v20 = vpop.permute.xlu1 %654 }
  0x87   : > { %5029 = vmatpush3.msk.msra.mxu1 %vm327_vm1, %v659_v19 }
  0x88   : > { %5033 = vmatprep.subr.mxu1 %v5185_v0  ;;  %5031 = vmatmul.mubr.msk.f32.vlgmr.msra.gmra.mxu1 %vm323_vm2, %v4868_v18 }
  0x89   : > { %5035 = vmatprep.mubr.msk.f32.mxu1 %vm5186_vm0, %v5185_v0 }
  0x8a   : > { %v657_v21 = vpop.permute.xlu1 %656  ;;  %v488_v22 = vpop.permute.xlu0 %487 }
  0x8b   : > { %v492_v23 = vsel %vm491_vm3, %v486_v17, %v488_v22  ;;  %v493_v24 = vsel %vm491_vm3, %v488_v22, %v490_v16  ;;  %v662_v25 = vsel %vm660_vm4, %v657_v21, %v659_v19  ;;  %v661_v26 = vsel %vm660_vm4, %v655_v20, %v657_v21 }
  0x8c   : > { %4863 = vmatprep.subr.msk.mxu0 %vm327_vm1, %v493_v24 }
  0x8d   : > { %4864 = vmatpush1.msk.msra.mxu0 %vm327_vm1, %v492_v23 }
  0x8e   : > { %v828_v27 = vpop.permute.xlu1 %827  ;;  %v826_v28 = vpop.permute.xlu0 %825  ;;  %4865 = vmatmul.mubr.msk.f32.vlgmr.msra.gmra.mxu0 %vm323_vm2, %v4862_v15  ;;  %4869 = vmatprep.subr.msk.mxu0 %vm327_vm1, %v662_v25 }
  0x8f   : > { %v831_v30 = vsel %vm829_vm5, %v826_v28, %v828_v27  ;;  %4870 = vmatpush1.msk.msra.mxu0 %vm327_vm1, %v661_v26  ;;  %5034 = vmatpush3.msk.msra.mxu1 %vm327_vm1, %v828_v27 }
  0x90   : > { %4875 = vmatprep.subr.msk.mxu0 %vm327_vm1, %v831_v30  ;;  %736 = vmatprep.mubr.f32.mxu0 %v5185_v0 }
  0x91   : > { %5038 = vmatprep.subr.mxu1 %v5185_v0  ;;  %5036 = vmatmul.mubr.msk.f32.vlgmr.msra.gmra.mxu1 %vm323_vm2, %v4874_v29 }
  0x92   : > { %v995_v31 = vpop.permute.xlu1 %994  ;;  %v824_v32 = vpop.permute.xlu0 %823  ;;  %4871 = vmatmul.mubr.msk.f32.vlgmr.msra.gmra.mxu0 %vm323_vm2, %v4868_v18  ;;  %5040 = vmatprep.mubr.msk.f32.mxu1 %vm5186_vm0, %v5185_v0 }
  0x93   : > { %v830_v33 = vsel %vm829_vm5, %v824_v32, %v826_v28  ;;  %905 = vmatprep.mubr.f32.mxu0 %v5185_v0 }
  0x94   : > { %4876 = vmatpush1.msk.msra.mxu0 %vm327_vm1, %v830_v33 }
  0x96   : > { %v993_v34 = vpop.permute.xlu1 %992  ;;  %v997_v35 = vpop.permute.xlu0 %996  ;;  %4877 = vmatmul.mubr.msk.f32.vlgmr.msra.gmra.mxu0 %vm323_vm2, %v4874_v29 }
  0x97   : > { %v999_v36 = vsel %vm998_vm6, %v993_v34, %v995_v31  ;;  %v1000_v37 = vsel %vm998_vm6, %v995_v31, %v997_v35  ;;  %5039 = vmatpush3.msk.msra.mxu1 %vm327_vm1, %v997_v35  ;;  %1074 = vmatprep.mubr.f32.mxu0 %v5185_v0 }
  0x98   : > { %4881 = vmatprep.subr.msk.mxu0 %vm327_vm1, %v1000_v37  ;;  %5043 = vmatprep.subr.mxu1 %v5185_v0 }
  0x99   : > { %4882 = vmatpush1.msk.msra.mxu0 %vm327_vm1, %v999_v36  ;;  %5041 = vmatmul.mubr.msk.f32.vlgmr.msra.gmra.mxu1 %vm323_vm2, %v4880_v38  ;;  %v1840_v36 = vlaneseq }
  0x9a   : > { %v1166_v39 = vpop.permute.xlu1 %1165  ;;  %v1164_v40 = vpop.permute.xlu0 %1163  ;;  %4883 = vmatmul.mubr.msk.f32.vlgmr.msra.gmra.mxu0 %vm323_vm2, %v4880_v38  ;;  %5045 = vmatprep.mubr.msk.f32.mxu1 %vm5186_vm0, %v5185_v0 }
  0x9b   : > { %v1169_v41 = vsel %vm1167_vm7, %v1164_v40, %v1166_v39  ;;  %5044 = vmatpush3.msk.msra.mxu1 %vm327_vm1, %v1166_v39  ;;  %1243 = vmatprep.mubr.f32.mxu0 %v5185_v0 }
  0x9c   : > { %4887 = vmatprep.subr.msk.mxu0 %vm327_vm1, %v1169_v41  ;;  %5048 = vmatprep.subr.mxu1 %v5185_v0 }
  0x9d   : > { %5046 = vmatmul.mubr.msk.f32.vlgmr.msra.gmra.mxu1 %vm323_vm2, %v4886_v42 }
  0x9e   : > { %v1333_v43 = vpop.permute.xlu1 %1332  ;;  %v1162_v44 = vpop.permute.xlu0 %1161  ;;  %5050 = vmatprep.mubr.msk.f32.mxu1 %vm5186_vm0, %v5185_v0 }
  0x9f   : > { %v1168_v45 = vsel %vm1167_vm7, %v1162_v44, %v1164_v40 }
  0xa0   : > { %4888 = vmatpush1.msk.msra.mxu0 %vm327_vm1, %v1168_v45 }
  0xa1   : > { %4889 = vmatmul.mubr.msk.f32.vlgmr.msra.gmra.mxu0 %vm323_vm2, %v4886_v42 }
  0xa2   : > { %v1331_v46 = vpop.permute.xlu1 %1330  ;;  %v1335_v47 = vpop.permute.xlu0 %1334  ;;  %1412 = vmatprep.mubr.f32.mxu0 %v5185_v0 }
  0xa3   : > { %v1337_v48 = vsel %vm1336_vm8, %v1331_v46, %v1333_v43  ;;  %v1338_v49 = vsel %vm1336_vm8, %v1333_v43, %v1335_v47  ;;  %5049 = vmatpush3.msk.msra.mxu1 %vm327_vm1, %v1335_v47  ;;  %v1841_v43 = vshrl.u32 %v1840_v36, 7 }
  0xa4   : > { %4893 = vmatprep.subr.msk.mxu0 %vm327_vm1, %v1338_v49  ;;  %5053 = vmatprep.subr.mxu1 %v5185_v0 }
  0xa5   : > { %4894 = vmatpush1.msk.msra.mxu0 %vm327_vm1, %v1337_v48  ;;  %5051 = vmatmul.mubr.msk.f32.vlgmr.msra.gmra.mxu1 %vm323_vm2, %v4892_v50 }
  0xa6   : > { %v1504_v51 = vpop.permute.xlu1 %1503  ;;  %v1502_v52 = vpop.permute.xlu0 %1501  ;;  %4895 = vmatmul.mubr.msk.f32.vlgmr.msra.gmra.mxu0 %vm323_vm2, %v4892_v50  ;;  %5055 = vmatprep.mubr.msk.f32.mxu1 %vm5186_vm0, %v5185_v0 }
  0xa7   : > { %v1507_v54 = vsel %vm1505_vm9, %v1502_v52, %v1504_v51  ;;  %5054 = vmatpush3.msk.msra.mxu1 %vm327_vm1, %v1504_v51  ;;  %1581 = vmatprep.mubr.f32.mxu0 %v5185_v0 }
  0xa8   : > { %4899 = vmatprep.subr.msk.mxu0 %vm327_vm1, %v1507_v54  ;;  %5058 = vmatprep.subr.mxu1 %v5185_v0 }
  0xa9   : > { %5056 = vmatmul.mubr.msk.f32.vlgmr.msra.gmra.mxu1 %vm323_vm2, %v4898_v53 }
  0xaa   : > { %v1671_v55 = vpop.permute.xlu1 %1670  ;;  %v1500_v56 = vpop.permute.xlu0 %1499  ;;  %5060 = vmatprep.mubr.msk.f32.mxu1 %vm5186_vm0, %v5185_v0 }
  0xab   : > { %v1506_v57 = vsel %vm1505_vm9, %v1500_v56, %v1502_v52  ;;  %v1850_v52 = vsub.s32 2, %v1841_v43 }
  0xac   : > { %4900 = vmatpush1.msk.msra.mxu0 %vm327_vm1, %v1506_v57  ;;  %v310_v57 = vld [vmem:[%s5720_s0] sm:$0x7] }
  0xad   : > { %4901 = vmatmul.mubr.msk.f32.vlgmr.msra.gmra.mxu0 %vm323_vm2, %v4898_v53 }
  0xae   : > { %v1669_v59 = vpop.permute.xlu1 %1668  ;;  %v1673_v60 = vpop.permute.xlu0 %1672  ;;  %1750 = vmatprep.mubr.f32.mxu0 %v5185_v0 }
  0xaf   : > { %v1675_v61 = vsel %vm1674_vm10, %v1669_v59, %v1671_v55  ;;  %v1676_v62 = vsel %vm1674_vm10, %v1671_v55, %v1673_v60  ;;  %5059 = vmatpush3.msk.msra.mxu1 %vm327_vm1, %v1673_v60  ;;  %v1842_v59 = vsub.s32 0, %v1841_v43 }
  0xb0   : > { %4905 = vmatprep.subr.msk.mxu0 %vm327_vm1, %v1676_v62  ;;  %5061 = vmatmul.mubr.msk.f32.vlgmr.msra.gmra.mxu1 %vm323_vm2, %v4904_v58 }
  0xb1   : > { %4906 = vmatpush1.msk.msra.mxu0 %vm327_vm1, %v1675_v61  ;;  %5063 = vmatprep.subr.mxu1 %v5185_v0  ;;  %vm1867_vm1 = vcmask 154624  }
  0xb2   : > { %4907 = vmatmul.mubr.msk.f32.vlgmr.msra.gmra.mxu0 %vm323_vm2, %v4904_v58  ;;  %5065 = vmatprep.mubr.msk.f32.mxu1 %vm5186_vm0, %v5185_v0  ;;  %vm1876_vm2 = vcmask 711680  }
  0xb3   : > { %1956 = vmatprep.mubr.f32.mxu0 %v5185_v0 }
  0xbb   : > { %v315_v11 = vpop.permute.xlu0 %314 }
  0xd5   : > { %v471_v63 = vpop.f32.mrf.mxu1  ;;  %v400_v3 = vpop.f32.mrf.mxu0 }
  0xd6   : > { %v477_v13 = vadd.f32 %v471_v63, %v315_v11  ;;  %v475_v20 = vadd.f32 %v400_v3, %v315_v11 }
  0xd7   : > { %v5022_v1 = vpop.f32.mrf.mxu1  ;;  %v402_v6 = vpop.f32.mrf.mxu0 }
  0xd8   : > { %v476_v25 = vadd.f32 %v402_v6, %v315_v11  ;;  %v5430_v1 = vrot.slane %v310_v57, %v1850_v52 }
 0x144   : > { %v640_v2 = vpop.f32.mrf.mxu1 }
 0x145   : > { %v646_v17 = vadd.f32 %v640_v2, %v477_v13 }
 0x146   : > { %v5027_v4 = vpop.f32.mrf.mxu1 }
 0x148   : > { %v809_v5 = vpop.f32.mrf.mxu1 }
 0x149   : > { %v815_v21 = vadd.f32 %v809_v5, %v646_v17 }
 0x14a   : > { %v5032_v7 = vpop.f32.mrf.mxu1 }
 0x14b   : > { %v5432_v7 = vrot.slane %v310_v57, %v1842_v59 }
 0x14e   : > { %v569_v8 = vpop.f32.mrf.mxu0 }
 0x14f   : > { %v644_v26 = vadd.f32 %v569_v8, %v475_v20  ;;  %v1846_v8 = vsub.s32 1, %v1841_v43 }
 0x150   : > { %v571_v9 = vpop.f32.mrf.mxu0 }
 0x151   : > { %v978_v10 = vpop.f32.mrf.mxu1  ;;  %v645_v32 = vadd.f32 %v571_v9, %v476_v25  ;;  %v1887_v25 = vld [vmem:[%s5724_s4] sm:$0xff] }
 0x152   : > { %v738_v12 = vpop.f32.mrf.mxu0  ;;  %v984_v27 = vadd.f32 %v978_v10, %v815_v21 }
 0x153   : > { %v5037_v14 = vpop.f32.mrf.mxu1  ;;  %v813_v31 = vadd.f32 %v738_v12, %v644_v26 }
 0x154   : > { %v740_v15 = vpop.f32.mrf.mxu0 }
 0x155   : > { %v814_v37 = vadd.f32 %v740_v15, %v645_v32 }
 0x156   : > { %v907_v16 = vpop.f32.mrf.mxu0 }
 0x157   : > { %v982_v38 = vadd.f32 %v907_v16, %v813_v31  ;;  %v5437_v16 = vrot.slane %v310_v57, %v1846_v8 }
 0x158   : > { %v909_v18 = vpop.f32.mrf.mxu0 }
 0x159   : > { %v1147_v19 = vpop.f32.mrf.mxu1  ;;  %v983_v44 = vadd.f32 %v909_v18, %v814_v37 }
 0x15a   : > { %v1076_v22 = vpop.f32.mrf.mxu0  ;;  %v1153_v33 = vadd.f32 %v1147_v19, %v984_v27  ;;  %v1878_v27 = vld [vmem:[%s5725_s5] sm:$0xff] }
 0x15b   : > { %v5042_v23 = vpop.f32.mrf.mxu1  ;;  %v1151_v45 = vadd.f32 %v1076_v22, %v982_v38 }
 0x15c   : > { %v1078_v28 = vpop.f32.mrf.mxu0 }
 0x15d   : > { %v1316_v24 = vpop.f32.mrf.mxu1  ;;  %v1152_v49 = vadd.f32 %v1078_v28, %v983_v44 }
 0x15e   : > { %v1322_v39 = vadd.f32 %v1316_v24, %v1153_v33 }
 0x15f   : > { %v5047_v29 = vpop.f32.mrf.mxu1 }
 0x161   : > { %v1245_v30 = vpop.f32.mrf.mxu0 }
 0x162   : > { %v1320_v50 = vadd.f32 %v1245_v30, %v1151_v45 }
 0x163   : > { %v1247_v34 = vpop.f32.mrf.mxu0 }
 0x164   : > { %v1321_v53 = vadd.f32 %v1247_v34, %v1152_v49  ;;  %v4912_v34 = vld [vmem:[%s5724_s4 + $0x8] sm:$0xff] }
 0x165   : > { %v1485_v35 = vpop.f32.mrf.mxu1 }
 0x166   : > { %v1414_v40 = vpop.f32.mrf.mxu0  ;;  %v1491_v47 = vadd.f32 %v1485_v35, %v1322_v39 }
 0x167   : > { %v5052_v41 = vpop.f32.mrf.mxu1  ;;  %v1489_v54 = vadd.f32 %v1414_v40, %v1320_v50 }
 0x168   : > { %v1416_v46 = vpop.f32.mrf.mxu0  ;;  %v4915_v41 = vld [vmem:[%s5724_s4 + $0x10] sm:$0xff] }
 0x169   : > { %v1654_v42 = vpop.f32.mrf.mxu1  ;;  %v1490_v60 = vadd.f32 %v1416_v46, %v1321_v53  ;;  %v4918_v46 = vld [vmem:[%s5724_s4 + $0x18] sm:$0xff] }
 0x16a   : > { %v1660_v55 = vadd.f32 %v1654_v42, %v1491_v47 }
 0x16b   : > { %v5057_v48 = vpop.f32.mrf.mxu1 }
 0x16d   : > { %v1583_v51 = vpop.f32.mrf.mxu0 }
 0x16e   : > { %v1658_v61 = vadd.f32 %v1583_v51, %v1489_v54  ;;  %v4921_v51 = vld [vmem:[%s5724_s4 + $0x20] sm:$0xff] }
 0x16f   : > { %v1585_v56 = vpop.f32.mrf.mxu0 }
 0x170   : > { %v1823_v58 = vpop.f32.mrf.mxu1  ;;  %v1659_v3 = vadd.f32 %v1585_v56, %v1490_v60  ;;  %v4924_v56 = vld [vmem:[%s5724_s4 + $0x28] sm:$0xff] }
 0x171   : > { %v1829_v62 = vadd.f32 %v1823_v58, %v1660_v55 }
 0x172   : > { %v1752_v63 = vpop.f32.mrf.mxu0  ;;  %v5062_v2 = vpop.f32.mrf.mxu1 }
 0x173   : > { %vm1832_vm12 = vcmp.ge.f32.partialorder %v1829_v62, 0.0  ;;  %v1835_v4 = vmul.f32 0.01, %v1829_v62  ;;  %v1827_v5 = vadd.f32 %v1752_v63, %v1658_v61  ;;  %v4927_v61 = vld [vmem:[%s5724_s4 + $0x30] sm:$0xff] }
 0x174   : > { %v1754_v6 = vpop.f32.mrf.mxu0 }
 0x175   : > { %vm1830_vm13 = vcmp.ge.f32.partialorder %v1827_v5, 0.0  ;;  %v1833_v9 = vmul.f32 0.01, %v1827_v5  ;;  %v1828_v10 = vadd.f32 %v1754_v6, %v1659_v3  ;;  %v1838_v11 = vsel %vm1832_vm12, %v1829_v62, %v1835_v4  ;;  %v4930_v4 = vld [vmem:[%s5724_s4 + $0x38] sm:$0xff] }
 0x176   : > { %v1857_v12 = vmul.f32 %v5430_v1, %v1838_v11 }
 0x177   : > { %vm1831_vm14 = vcmp.ge.f32.partialorder %v1828_v10, 0.0  ;;  %v1834_v13 = vmul.f32 0.01, %v1828_v10  ;;  %v1836_v14 = vsel %vm1830_vm13, %v1827_v5, %v1833_v9 }
 0x178   : > { %1865 = vrot.lane.b32.xlu0 %v1857_v12, %s5196_s12  ;;  %v1855_v15 = vmul.f32 %v5432_v7, %v1836_v14 }
 0x179   : > { %v1837_v17 = vsel %vm1831_vm14, %v1828_v10, %v1834_v13  ;;  %v4933_v10 = vld [vmem:[%s5724_s4 + $0x40] sm:$0xff] }
 0x17a   : > { %1861 = vrot.lane.b32.xlu1 %v1855_v15, %s5196_s12  ;;  %v1856_v18 = vmul.f32 %v5437_v16, %v1837_v17 }
 0x17e   : > { %1863 = vrot.lane.b32.xlu1 %v1856_v18, %s5196_s12 }
 0x1ea   : > { %v1866_v20 = vpop.permute.xlu0 %1865 }
 0x1ec   : > { %v1862_v19 = vpop.permute.xlu1 %1861 }
 0x1ed   : > { %1874 = vst.msk [vmem:[#allocation2] sm:$0xff] %vm1873_vm15, %v1862_v19 }
 0x1f0   : > { %v1864_v21 = vpop.permute.xlu1 %1863 }
 0x1f1   : > { %v1868_v22 = vsel %vm1867_vm1, %v1862_v19, %v1864_v21  ;;  %v1869_v23 = vsel %vm1867_vm1, %v1864_v21, %v1866_v20 }
 0x1f2   : > { %1877 = vst.msk [vmem:[#allocation2 + $0x10] sm:$0xff] %vm1876_vm2, %v1869_v23  ;;  %1922 = vmatprep.subr.mxu0 %v1868_v22 }
 0x1f4   : > { %v1884_v24 = vld [vmem:[#allocation2] sm:$0xff] }
 0x1f5   : > { %2201 = vrot.lane.b32.xlu0 %v1884_v24, %s5188_s14  ;;  %2041 = vrot.lane.b32.xlu1 %v1884_v24, %s5187_s11 }
 0x1f6   : > { %1923 = vmatpush1.msra.mxu0 %v1884_v24 }
 0x1f7   : > { %4910 = vmatmul.mubr.msk.f32.vlgmr.msra.gmra.mxu0 %vm1888_vm11, %v1887_v25 }
 0x1f8   : > { %2119 = vmatprep.mubr.f32.mxu0 %v5185_v0 }
 0x1f9   : > { %2521 = vrot.lane.b32.xlu0 %v1884_v24, %s5190_s16  ;;  %2361 = vrot.lane.b32.xlu1 %v1884_v24, %s5189_s15  ;;  %v1886_v26 = vld [vmem:[#allocation2 + $0x10] sm:$0xff] }
 0x1fa   : > { %5064 = vmatpush3.msra.mxu1 %v1886_v26 }
 0x1fb   : > { %5068 = vmatprep.subr.mxu1 %v5185_v0  ;;  %5066 = vmatmul.mubr.msk.f32.vlgmr.msra.gmra.mxu1 %vm1888_vm11, %v1887_v25 }
 0x1fc   : > { %5070 = vmatprep.mubr.msk.f32.mxu1 %vm5186_vm0, %v5185_v0 }
 0x1fd   : > { %2841 = vrot.lane.b32.xlu0 %v1884_v24, %s5192_s18  ;;  %2681 = vrot.lane.b32.xlu1 %v1884_v24, %s5191_s17 }
 0x201   : > { %3001 = vrot.lane.b32.xlu1 %v1884_v24, %s5194_s19  ;;  %2045 = vrot.lane.b32.xlu0 %v1886_v26, %s5187_s11 }
 0x205   : > { %2203 = vrot.lane.b32.xlu0 %v1868_v22, %s5188_s14  ;;  %2043 = vrot.lane.b32.xlu1 %v1868_v22, %s5187_s11 }
 0x209   : > { %2365 = vrot.lane.b32.xlu0 %v1886_v26, %s5189_s15  ;;  %2205 = vrot.lane.b32.xlu1 %v1886_v26, %s5188_s14 }
 0x20d   : > { %2523 = vrot.lane.b32.xlu0 %v1868_v22, %s5190_s16  ;;  %2363 = vrot.lane.b32.xlu1 %v1868_v22, %s5189_s15 }
 0x211   : > { %2685 = vrot.lane.b32.xlu0 %v1886_v26, %s5191_s17  ;;  %2525 = vrot.lane.b32.xlu1 %v1886_v26, %s5190_s16 }
 0x215   : > { %2843 = vrot.lane.b32.xlu0 %v1868_v22, %s5192_s18  ;;  %2683 = vrot.lane.b32.xlu1 %v1868_v22, %s5191_s17 }
 0x219   : > { %3005 = vrot.lane.b32.xlu0 %v1886_v26, %s5194_s19  ;;  %2845 = vrot.lane.b32.xlu1 %v1886_v26, %s5192_s18 }
 0x21d   : > { %3163 = vrot.lane.b32.xlu0 %v1868_v22, %s5195_s20  ;;  %3003 = vrot.lane.b32.xlu1 %v1868_v22, %s5194_s19 }
 0x221   : > { %3161 = vrot.lane.b32.xlu0 %v1884_v24, %s5195_s20  ;;  %3165 = vrot.lane.b32.xlu1 %v1886_v26, %s5195_s20 }
 0x225   : > { %1881 = vperm.xlu1 %5175, %v1878_v27  }
 0x267   : > { %v2202_v28 = vpop.permute.xlu0 %2201  ;;  %v2042_v29 = vpop.permute.xlu1 %2041 }
 0x26b   : > { %v2522_v30 = vpop.permute.xlu0 %2521  ;;  %v2362_v31 = vpop.permute.xlu1 %2361 }
 0x26f   : > { %v5482_v32 = vpop.permute.xlu0 %2841  ;;  %v2682_v33 = vpop.permute.xlu1 %2681 }
 0x273   : > { %v2046_v35 = vpop.permute.xlu0 %2045  ;;  %v5487_v36 = vpop.permute.xlu1 %3001 }
 0x274   : > { %5069 = vmatpush3.msra.mxu1 %v2046_v35 }
 0x275   : > { %5071 = vmatmul.mubr.msk.f32.vlgmr.msra.gmra.mxu1 %vm1888_vm11, %v4912_v34  ;;  %5073 = vmatprep.subr.mxu1 %v5185_v0 }
 0x276   : > { %5075 = vmatprep.mubr.msk.f32.mxu1 %vm5186_vm0, %v5185_v0 }
 0x277   : > { %v2204_v37 = vpop.permute.xlu0 %2203  ;;  %v2044_v38 = vpop.permute.xlu1 %2043 }
 0x278   : > { %v2047_v39 = vsel %vm491_vm3, %v2042_v29, %v2044_v38  ;;  %v2048_v40 = vsel %vm491_vm3, %v2044_v38, %v2046_v35  ;;  %v2207_v45 = vsel %vm660_vm4, %v2202_v28, %v2204_v37 }
 0x279   : > { %2085 = vmatprep.subr.mxu0 %v2048_v40 }
 0x27a   : > { %2086 = vmatpush1.msra.mxu0 %v2047_v39 }
 0x27b   : > { %v2366_v42 = vpop.permute.xlu0 %2365  ;;  %4913 = vmatmul.mubr.msk.f32.vlgmr.msra.gmra.mxu0 %vm1888_vm11, %v4912_v34  ;;  %v2206_v43 = vpop.permute.xlu1 %2205 }
 0x27c   : > { %5074 = vmatpush3.msra.mxu1 %v2206_v43  ;;  %v2208_v44 = vsel %vm660_vm4, %v2204_v37, %v2206_v43  ;;  %2279 = vmatprep.mubr.f32.mxu0 %v5185_v0 }
 0x27d   : > { %2245 = vmatprep.subr.mxu0 %v2208_v44  ;;  %5076 = vmatmul.mubr.msk.f32.vlgmr.msra.gmra.mxu1 %vm1888_vm11, %v4915_v41 }
 0x27e   : > { %5078 = vmatprep.subr.mxu1 %v5185_v0  ;;  %2246 = vmatpush1.msra.mxu0 %v2207_v45 }
 0x27f   : > { %5079 = vmatpush3.msra.mxu1 %v2366_v42  ;;  %v2524_v47 = vpop.permute.xlu0 %2523  ;;  %4916 = vmatmul.mubr.msk.f32.vlgmr.msra.gmra.mxu0 %vm1888_vm11, %v4915_v41  ;;  %v2364_v48 = vpop.permute.xlu1 %2363 }
 0x280   : > { %v2367_v49 = vsel %vm829_vm5, %v2362_v31, %v2364_v48  ;;  %5080 = vmatprep.mubr.msk.f32.mxu1 %vm5186_vm0, %v5185_v0  ;;  %v2368_v50 = vsel %vm829_vm5, %v2364_v48, %v2366_v42  ;;  %2439 = vmatprep.mubr.f32.mxu0 %v5185_v0  ;;  %v2527_v55 = vsel %vm998_vm6, %v2522_v30, %v2524_v47 }
 0x281   : > { %2405 = vmatprep.subr.mxu0 %v2368_v50  ;;  %5081 = vmatmul.mubr.msk.f32.vlgmr.msra.gmra.mxu1 %vm1888_vm11, %v4918_v46 }
 0x282   : > { %2406 = vmatpush1.msra.mxu0 %v2367_v49  ;;  %5083 = vmatprep.subr.mxu1 %v5185_v0 }
 0x283   : > { %v2686_v52 = vpop.permute.xlu0 %2685  ;;  %4919 = vmatmul.mubr.msk.f32.vlgmr.msra.gmra.mxu0 %vm1888_vm11, %v4918_v46  ;;  %v2526_v53 = vpop.permute.xlu1 %2525  ;;  %5085 = vmatprep.mubr.msk.f32.mxu1 %vm5186_vm0, %v5185_v0 }
 0x284   : > { %5084 = vmatpush3.msra.mxu1 %v2526_v53  ;;  %v2528_v54 = vsel %vm998_vm6, %v2524_v47, %v2526_v53  ;;  %2599 = vmatprep.mubr.f32.mxu0 %v5185_v0 }
 0x285   : > { %2565 = vmatprep.subr.mxu0 %v2528_v54  ;;  %5086 = vmatmul.mubr.msk.f32.vlgmr.msra.gmra.mxu1 %vm1888_vm11, %v4921_v51 }
 0x286   : > { %5088 = vmatprep.subr.mxu1 %v5185_v0  ;;  %2566 = vmatpush1.msra.mxu0 %v2527_v55 }
 0x287   : > { %5089 = vmatpush3.msra.mxu1 %v2686_v52  ;;  %v2844_v57 = vpop.permute.xlu0 %2843  ;;  %4922 = vmatmul.mubr.msk.f32.vlgmr.msra.gmra.mxu0 %vm1888_vm11, %v4921_v51  ;;  %v2684_v58 = vpop.permute.xlu1 %2683 }
 0x288   : > { %v2687_v59 = vsel %vm1167_vm7, %v2682_v33, %v2684_v58  ;;  %5090 = vmatprep.mubr.msk.f32.mxu1 %vm5186_vm0, %v5185_v0  ;;  %v2688_v60 = vsel %vm1167_vm7, %v2684_v58, %v2686_v52  ;;  %2759 = vmatprep.mubr.f32.mxu0 %v5185_v0  ;;  %v2847_v3 = vsel %vm1336_vm8, %v5482_v32, %v2844_v57 }
 0x289   : > { %2725 = vmatprep.subr.mxu0 %v2688_v60  ;;  %5091 = vmatmul.mubr.msk.f32.vlgmr.msra.gmra.mxu1 %vm1888_vm11, %v4924_v56 }
 0x28a   : > { %2726 = vmatpush1.msra.mxu0 %v2687_v59  ;;  %5093 = vmatprep.subr.mxu1 %v5185_v0 }
 0x28b   : > { %v3006_v62 = vpop.permute.xlu0 %3005  ;;  %4925 = vmatmul.mubr.msk.f32.vlgmr.msra.gmra.mxu0 %vm1888_vm11, %v4924_v56  ;;  %v2846_v63 = vpop.permute.xlu1 %2845  ;;  %5095 = vmatprep.mubr.msk.f32.mxu1 %vm5186_vm0, %v5185_v0 }
 0x28c   : > { %5094 = vmatpush3.msra.mxu1 %v2846_v63  ;;  %v2848_v2 = vsel %vm1336_vm8, %v2844_v57, %v2846_v63  ;;  %2919 = vmatprep.mubr.f32.mxu0 %v5185_v0 }
 0x28d   : > { %2885 = vmatprep.subr.mxu0 %v2848_v2  ;;  %5096 = vmatmul.mubr.msk.f32.vlgmr.msra.gmra.mxu1 %vm1888_vm11, %v4927_v61 }
 0x28e   : > { %5098 = vmatprep.subr.mxu1 %v5185_v0  ;;  %2886 = vmatpush1.msra.mxu0 %v2847_v3 }
 0x28f   : > { %5099 = vmatpush3.msra.mxu1 %v3006_v62  ;;  %v3164_v5 = vpop.permute.xlu0 %3163  ;;  %4928 = vmatmul.mubr.msk.f32.vlgmr.msra.gmra.mxu0 %vm1888_vm11, %v4927_v61  ;;  %v3004_v6 = vpop.permute.xlu1 %3003 }
 0x290   : > { %v3007_v8 = vsel %vm1505_vm9, %v5487_v36, %v3004_v6  ;;  %5100 = vmatprep.mubr.msk.f32.mxu1 %vm5186_vm0, %v5185_v0  ;;  %v3008_v9 = vsel %vm1505_vm9, %v3004_v6, %v3006_v62  ;;  %3079 = vmatprep.mubr.f32.mxu0 %v5185_v0 }
 0x291   : > { %3045 = vmatprep.subr.mxu0 %v3008_v9  ;;  %5101 = vmatmul.mubr.msk.f32.vlgmr.msra.gmra.mxu1 %vm1888_vm11, %v4930_v4 }
 0x292   : > { %3046 = vmatpush1.msra.mxu0 %v3007_v8  ;;  %5103 = vmatprep.subr.mxu1 %v5185_v0 }
 0x293   : > { %v3162_v11 = vpop.permute.xlu0 %3161  ;;  %4931 = vmatmul.mubr.msk.f32.vlgmr.msra.gmra.mxu0 %vm1888_vm11, %v4930_v4  ;;  %v3166_v12 = vpop.permute.xlu1 %3165  ;;  %5105 = vmatprep.mubr.msk.f32.mxu1 %vm5186_vm0, %v5185_v0 }
 0x294   : > { %v3167_v13 = vsel %vm1674_vm10, %v3162_v11, %v3164_v5  ;;  %5104 = vmatpush3.msra.mxu1 %v3166_v12  ;;  %v3168_v14 = vsel %vm1674_vm10, %v3164_v5, %v3166_v12  ;;  %3239 = vmatprep.mubr.f32.mxu0 %v5185_v0 }
 0x295   : > { %3205 = vmatprep.subr.mxu0 %v3168_v14  ;;  %5106 = vmatmul.mubr.msk.f32.vlgmr.msra.gmra.mxu1 %vm1888_vm11, %v4933_v10 }
 0x296   : > { %3206 = vmatpush1.msra.mxu0 %v3167_v13  ;;  %5108 = vmatprep.subr.mxu1 %v5185_v0 }
 0x297   : > { %4934 = vmatmul.mubr.msk.f32.vlgmr.msra.gmra.mxu0 %vm1888_vm11, %v4933_v10  ;;  %5110 = vmatprep.mubr.msk.f32.mxu1 %vm5186_vm0, %v5185_v0 }
 0x298   : > { %3425 = vmatprep.mubr.f32.mxu0 %v5185_v0 }
 0x2a0   : > { %v1882_v20 = vpop.permute.xlu1 %1881 }
 0x2b7   : > { %v1958_v18 = vpop.f32.mrf.mxu0 }
 0x2b8   : > { %v2033_v40 = vadd.f32 %v1958_v18, %v1882_v20 }
 0x2b9   : > { %v1960_v23 = vpop.f32.mrf.mxu0 }
 0x2ba   : > { %v2034_v45 = vadd.f32 %v1960_v23, %v1882_v20 }
 0x2bb   : > { %v2029_v15 = vpop.f32.mrf.mxu1 }
 0x2bc   : > { %v2035_v22 = vadd.f32 %v2029_v15, %v1882_v20 }
 0x2bd   : > { %v5067_v17 = vpop.f32.mrf.mxu1 }
 0x335   : > { %v2192_v19 = vpop.f32.mrf.mxu1 }
 0x336   : > { %v2198_v25 = vadd.f32 %v2192_v19, %v2035_v22 }
 0x337   : > { %v5072_v21 = vpop.f32.mrf.mxu1 }
 0x33b   : > { %v2121_v24 = vpop.f32.mrf.mxu0 }
 0x33c   : > { %v2196_v44 = vadd.f32 %v2121_v24, %v2033_v40 }
 0x33d   : > { %v2123_v26 = vpop.f32.mrf.mxu0  ;;  %v2352_v27 = vpop.f32.mrf.mxu1 }
 0x33e   : > { %v2358_v30 = vadd.f32 %v2352_v27, %v2198_v25  ;;  %v2197_v48 = vadd.f32 %v2123_v26, %v2034_v45 }
 0x33f   : > { %v2281_v28 = vpop.f32.mrf.mxu0  ;;  %v5077_v29 = vpop.f32.mrf.mxu1 }
 0x340   : > { %v2356_v49 = vadd.f32 %v2281_v28, %v2196_v44 }
 0x341   : > { %v2283_v31 = vpop.f32.mrf.mxu0  ;;  %v2512_v32 = vpop.f32.mrf.mxu1 }
 0x342   : > { %v2518_v35 = vadd.f32 %v2512_v32, %v2358_v30  ;;  %v2357_v53 = vadd.f32 %v2283_v31, %v2197_v48  ;;  %v4941_v48 = vld [vmem:[%s5726_s6 + $0x8] sm:$0xf] }
 0x343   : > { %v2441_v33 = vpop.f32.mrf.mxu0  ;;  %v5082_v34 = vpop.f32.mrf.mxu1 }
 0x344   : > { %v2516_v54 = vadd.f32 %v2441_v33, %v2356_v49  ;;  %v3348_v34 = vld [vmem:[%s5727_s7] sm:$0xf] }
 0x345   : > { %v2443_v36 = vpop.f32.mrf.mxu0  ;;  %v2672_v37 = vpop.f32.mrf.mxu1 }
 0x346   : > { %v2678_v41 = vadd.f32 %v2672_v37, %v2518_v35  ;;  %v2517_v57 = vadd.f32 %v2443_v36, %v2357_v53  ;;  %v4944_v53 = vld [vmem:[%s5726_s6 + $0xc] sm:$0xf] }
 0x347   : > { %v2601_v38 = vpop.f32.mrf.mxu0  ;;  %v5087_v39 = vpop.f32.mrf.mxu1 }
 0x348   : > { %v2676_v58 = vadd.f32 %v2601_v38, %v2516_v54 }
 0x349   : > { %v2603_v42 = vpop.f32.mrf.mxu0  ;;  %v2832_v43 = vpop.f32.mrf.mxu1 }
 0x34a   : > { %v2838_v50 = vadd.f32 %v2832_v43, %v2678_v41  ;;  %v2677_v62 = vadd.f32 %v2603_v42, %v2517_v57  ;;  %v4938_v41 = vld [vmem:[%s5726_s6 + $0x4] sm:$0xf] }
 0x34b   : > { %v2761_v46 = vpop.f32.mrf.mxu0  ;;  %v5092_v47 = vpop.f32.mrf.mxu1 }
 0x34c   : > { %v2836_v63 = vadd.f32 %v2761_v46, %v2676_v58  ;;  %v4947_v58 = vld [vmem:[%s5726_s6 + $0x10] sm:$0xf] }
 0x34d   : > { %v2763_v51 = vpop.f32.mrf.mxu0  ;;  %v2992_v52 = vpop.f32.mrf.mxu1 }
 0x34e   : > { %v2998_v59 = vadd.f32 %v2992_v52, %v2838_v50  ;;  %v2837_v4 = vadd.f32 %v2763_v51, %v2677_v62 }
 0x34f   : > { %v2921_v55 = vpop.f32.mrf.mxu0  ;;  %v5097_v56 = vpop.f32.mrf.mxu1 }
 0x350   : > { %v2996_v5 = vadd.f32 %v2921_v55, %v2836_v63  ;;  %v4950_v63 = vld [vmem:[%s5726_s6 + $0x14] sm:$0xf] }
 0x351   : > { %v2923_v60 = vpop.f32.mrf.mxu0  ;;  %v3152_v61 = vpop.f32.mrf.mxu1 }
 0x352   : > { %v3158_v6 = vadd.f32 %v3152_v61, %v2998_v59  ;;  %v2997_v10 = vadd.f32 %v2923_v60, %v2837_v4 }
 0x353   : > { %v3081_v2 = vpop.f32.mrf.mxu0  ;;  %v5102_v3 = vpop.f32.mrf.mxu1 }
 0x354   : > { %v3156_v11 = vadd.f32 %v3081_v2, %v2996_v5 }
 0x355   : > { %v3083_v8 = vpop.f32.mrf.mxu0  ;;  %v3312_v9 = vpop.f32.mrf.mxu1 }
 0x356   : > { %v3318_v12 = vadd.f32 %v3312_v9, %v3158_v6  ;;  %v3157_v15 = vadd.f32 %v3083_v8, %v2997_v10  ;;  %v4953_v6 = vld [vmem:[%s5726_s6 + $0x18] sm:$0xf] }
 0x357   : > { %v3241_v13 = vpop.f32.mrf.mxu0  ;;  %v5107_v14 = vpop.f32.mrf.mxu1 }
 0x358   : > { %v3316_v17 = vadd.f32 %v3241_v13, %v3156_v11  ;;  %v3324_v19 = vmul.f32 0.01, %v3318_v12  ;;  %vm3321_vm13 = vcmp.ge.f32.partialorder %v3318_v12, 0.0 }
 0x359   : > { %v3243_v18 = vpop.f32.mrf.mxu0 }
 0x35a   : > { %vm3319_vm12 = vcmp.ge.f32.partialorder %v3316_v17, 0.0  ;;  %v3322_v20 = vmul.f32 0.01, %v3316_v17  ;;  %v3317_v21 = vadd.f32 %v3243_v18, %v3157_v15  ;;  %v3327_v26 = vsel %vm3321_vm13, %v3318_v12, %v3324_v19  ;;  %v4956_v12 = vld [vmem:[%s5726_s6 + $0x1c] sm:$0xf] }
 0x35b   : > { %v3330_v28 = vmul.f32 %v3327_v26, %v5430_v1  ;;  %v4959_v18 = vld [vmem:[%s5726_s6 + $0x20] sm:$0xf] }
 0x35c   : > { %vm3320_vm14 = vcmp.ge.f32.partialorder %v3317_v21, 0.0  ;;  %v3323_v22 = vmul.f32 0.01, %v3317_v21  ;;  %v3325_v23 = vsel %vm3319_vm12, %v3316_v17, %v3322_v20 }
 0x35d   : > { %v3328_v24 = vmul.f32 %v3325_v23, %v5432_v7 }
 0x35e   : > { %v3326_v25 = vsel %vm3320_vm14, %v3317_v21, %v3323_v22 }
 0x35f   : > { %3334 = vrot.lane.b32.xlu0 %v3328_v24, %s5196_s12  ;;  %v3329_v27 = vmul.f32 %v3326_v25, %v5437_v16  ;;  %v3357_v16 = vld [vmem:[%s5726_s6] sm:$0xf] }
 0x361   : > { %3336 = vrot.lane.b32.xlu1 %v3329_v27, %s5196_s12 }
 0x363   : > { %3338 = vrot.lane.b32.xlu0 %v3330_v28, %s5196_s12 }
 0x3d1   : > { %v3335_v29 = vpop.permute.xlu0 %3334 }
 0x3d2   : > { %3345 = vst.msk [vmem:[#allocation2] sm:$0xff] %vm1873_vm15, %v3335_v29 }
 0x3d3   : > { %v3337_v30 = vpop.permute.xlu1 %3336 }
 0x3d4   : > { %v3340_v31 = vsel %vm1867_vm1, %v3335_v29, %v3337_v30 }
 0x3d5   : > { %v3339_v32 = vpop.permute.xlu0 %3338  ;;  %3391 = vmatprep.subr.mxu0 %v3340_v31 }
 0x3d6   : > { %v3341_v7 = vsel %vm1867_vm1, %v3337_v30, %v3339_v32 }
 0x3d7   : > { %3347 = vst.msk [vmem:[#allocation2 + $0x10] sm:$0xff] %vm1876_vm2, %v3341_v7 }
 0x3d9   : > { %v3354_v33 = vld [vmem:[#allocation2] sm:$0xff] }
 0x3da   : > { %3670 = vrot.lane.b32.xlu0 %v3354_v33, %s5188_s14  ;;  %3510 = vrot.lane.b32.xlu1 %v3354_v33, %s5187_s11 }
 0x3db   : > { %3392 = vmatpush1.msra.mxu0 %v3354_v33 }
 0x3dc   : > { %4936 = vmatmul.mubr.msk.f32.vlgmr.msra.gmra.mxu0 %vm1888_vm11, %v3357_v16 }
 0x3dd   : > { %3588 = vmatprep.mubr.f32.mxu0 %v5185_v0 }
 0x3de   : > { %3990 = vrot.lane.b32.xlu0 %v3354_v33, %s5190_s16  ;;  %3830 = vrot.lane.b32.xlu1 %v3354_v33, %s5189_s15  ;;  %v3356_v1 = vld [vmem:[#allocation2 + $0x10] sm:$0xff] }
 0x3df   : > { %5109 = vmatpush3.msra.mxu1 %v3356_v1 }
 0x3e0   : > { %5111 = vmatmul.mubr.msk.f32.vlgmr.msra.gmra.mxu1 %vm1888_vm11, %v3357_v16  ;;  %5113 = vmatprep.subr.mxu1 %v5185_v0 }
 0x3e1   : > { %5115 = vmatprep.mubr.msk.f32.mxu1 %vm5186_vm0, %v5185_v0 }
 0x3e2   : > { %4310 = vrot.lane.b32.xlu0 %v3354_v33, %s5192_s18  ;;  %4150 = vrot.lane.b32.xlu1 %v3354_v33, %s5191_s17 }
 0x3e6   : > { %4470 = vrot.lane.b32.xlu1 %v3354_v33, %s5194_s19  ;;  %3514 = vrot.lane.b32.xlu0 %v3356_v1, %s5187_s11 }
 0x3ea   : > { %3512 = vrot.lane.b32.xlu1 %v3340_v31, %s5187_s11  ;;  %3672 = vrot.lane.b32.xlu0 %v3340_v31, %s5188_s14 }
 0x3ee   : > { %3674 = vrot.lane.b32.xlu1 %v3356_v1, %s5188_s14  ;;  %3834 = vrot.lane.b32.xlu0 %v3356_v1, %s5189_s15  ;;  %s305_s14 = scalar_lea.vmem %s5728_s8, %s5153_s29 }
 0x3f2   : > { %3832 = vrot.lane.b32.xlu1 %v3340_v31, %s5189_s15  ;;  %3992 = vrot.lane.b32.xlu0 %v3340_v31, %s5190_s16 }
 0x3f6   : > { %3994 = vrot.lane.b32.xlu1 %v3356_v1, %s5190_s16  ;;  %4154 = vrot.lane.b32.xlu0 %v3356_v1, %s5191_s17 }
 0x3fa   : > { %4152 = vrot.lane.b32.xlu1 %v3340_v31, %s5191_s17  ;;  %4312 = vrot.lane.b32.xlu0 %v3340_v31, %s5192_s18 }
 0x3fe   : > { %4314 = vrot.lane.b32.xlu1 %v3356_v1, %s5192_s18  ;;  %4474 = vrot.lane.b32.xlu0 %v3356_v1, %s5194_s19 }
 0x402   : > { %4472 = vrot.lane.b32.xlu1 %v3340_v31, %s5194_s19  ;;  %4632 = vrot.lane.b32.xlu0 %v3340_v31, %s5195_s20 }
 0x406   : > { %4634 = vrot.lane.b32.xlu1 %v3356_v1, %s5195_s20  ;;  %4630 = vrot.lane.b32.xlu0 %v3354_v33, %s5195_s20 }
 0x40a   : > { %3351 = vperm.xlu1 %5175, %v3348_v34  }
 0x44c   : > { %v3511_v35 = vpop.permute.xlu1 %3510  ;;  %v3671_v36 = vpop.permute.xlu0 %3670 }
 0x450   : > { %v3831_v37 = vpop.permute.xlu1 %3830  ;;  %v3991_v38 = vpop.permute.xlu0 %3990 }
 0x454   : > { %v4151_v39 = vpop.permute.xlu1 %4150  ;;  %v5622_v40 = vpop.permute.xlu0 %4310 }
 0x458   : > { %v5627_v42 = vpop.permute.xlu1 %4470  ;;  %v3515_v43 = vpop.permute.xlu0 %3514 }
 0x459   : > { %5114 = vmatpush3.msra.mxu1 %v3515_v43 }
 0x45a   : > { %5116 = vmatmul.mubr.msk.f32.vlgmr.msra.gmra.mxu1 %vm1888_vm11, %v4938_v41  ;;  %5118 = vmatprep.subr.mxu1 %v5185_v0 }
 0x45b   : > { %5120 = vmatprep.mubr.msk.f32.mxu1 %vm5186_vm0, %v5185_v0 }
 0x45c   : > { %v3513_v44 = vpop.permute.xlu1 %3512  ;;  %v3673_v45 = vpop.permute.xlu0 %3672 }
 0x45d   : > { %v3516_v46 = vsel %vm491_vm3, %v3511_v35, %v3513_v44  ;;  %v3517_v47 = vsel %vm491_vm3, %v3513_v44, %v3515_v43  ;;  %v3676_v52 = vsel %vm660_vm4, %v3671_v36, %v3673_v45 }
 0x45e   : > { %3554 = vmatprep.subr.mxu0 %v3517_v47 }
 0x45f   : > { %3555 = vmatpush1.msra.mxu0 %v3516_v46 }
 0x460   : > { %v3675_v49 = vpop.permute.xlu1 %3674  ;;  %4939 = vmatmul.mubr.msk.f32.vlgmr.msra.gmra.mxu0 %vm1888_vm11, %v4938_v41  ;;  %v3835_v50 = vpop.permute.xlu0 %3834 }
 0x461   : > { %5119 = vmatpush3.msra.mxu1 %v3675_v49  ;;  %v3677_v51 = vsel %vm660_vm4, %v3673_v45, %v3675_v49  ;;  %3748 = vmatprep.mubr.f32.mxu0 %v5185_v0 }
 0x462   : > { %3714 = vmatprep.subr.mxu0 %v3677_v51  ;;  %5121 = vmatmul.mubr.msk.f32.vlgmr.msra.gmra.mxu1 %vm1888_vm11, %v4941_v48 }
 0x463   : > { %5123 = vmatprep.subr.mxu1 %v5185_v0  ;;  %3715 = vmatpush1.msra.mxu0 %v3676_v52 }
 0x464   : > { %5124 = vmatpush3.msra.mxu1 %v3835_v50  ;;  %v3833_v54 = vpop.permute.xlu1 %3832  ;;  %4942 = vmatmul.mubr.msk.f32.vlgmr.msra.gmra.mxu0 %vm1888_vm11, %v4941_v48  ;;  %v3993_v55 = vpop.permute.xlu0 %3992 }
 0x465   : > { %v3836_v56 = vsel %vm829_vm5, %v3831_v37, %v3833_v54  ;;  %5125 = vmatprep.mubr.msk.f32.mxu1 %vm5186_vm0, %v5185_v0  ;;  %v3837_v57 = vsel %vm829_vm5, %v3833_v54, %v3835_v50  ;;  %3908 = vmatprep.mubr.f32.mxu0 %v5185_v0  ;;  %v3996_v62 = vsel %vm998_vm6, %v3991_v38, %v3993_v55 }
 0x466   : > { %3874 = vmatprep.subr.mxu0 %v3837_v57  ;;  %5126 = vmatmul.mubr.msk.f32.vlgmr.msra.gmra.mxu1 %vm1888_vm11, %v4944_v53 }
 0x467   : > { %3875 = vmatpush1.msra.mxu0 %v3836_v56  ;;  %5128 = vmatprep.subr.mxu1 %v5185_v0 }
 0x468   : > { %v3995_v59 = vpop.permute.xlu1 %3994  ;;  %4945 = vmatmul.mubr.msk.f32.vlgmr.msra.gmra.mxu0 %vm1888_vm11, %v4944_v53  ;;  %v4155_v60 = vpop.permute.xlu0 %4154  ;;  %5130 = vmatprep.mubr.msk.f32.mxu1 %vm5186_vm0, %v5185_v0 }
 0x469   : > { %5129 = vmatpush3.msra.mxu1 %v3995_v59  ;;  %v3997_v61 = vsel %vm998_vm6, %v3993_v55, %v3995_v59  ;;  %4068 = vmatprep.mubr.f32.mxu0 %v5185_v0 }
 0x46a   : > { %4034 = vmatprep.subr.mxu0 %v3997_v61  ;;  %5131 = vmatmul.mubr.msk.f32.vlgmr.msra.gmra.mxu1 %vm1888_vm11, %v4947_v58 }
 0x46b   : > { %5133 = vmatprep.subr.mxu1 %v5185_v0  ;;  %4035 = vmatpush1.msra.mxu0 %v3996_v62 }
 0x46c   : > { %5134 = vmatpush3.msra.mxu1 %v4155_v60  ;;  %v4153_v2 = vpop.permute.xlu1 %4152  ;;  %4948 = vmatmul.mubr.msk.f32.vlgmr.msra.gmra.mxu0 %vm1888_vm11, %v4947_v58  ;;  %v4313_v3 = vpop.permute.xlu0 %4312 }
 0x46d   : > { %v4156_v4 = vsel %vm1167_vm7, %v4151_v39, %v4153_v2  ;;  %5135 = vmatprep.mubr.msk.f32.mxu1 %vm5186_vm0, %v5185_v0  ;;  %v4157_v5 = vsel %vm1167_vm7, %v4153_v2, %v4155_v60  ;;  %4228 = vmatprep.mubr.f32.mxu0 %v5185_v0  ;;  %v4316_v11 = vsel %vm1336_vm8, %v5622_v40, %v4313_v3 }
 0x46e   : > { %4194 = vmatprep.subr.mxu0 %v4157_v5  ;;  %5136 = vmatmul.mubr.msk.f32.vlgmr.msra.gmra.mxu1 %vm1888_vm11, %v4950_v63 }
 0x46f   : > { %4195 = vmatpush1.msra.mxu0 %v4156_v4  ;;  %5138 = vmatprep.subr.mxu1 %v5185_v0 }
 0x470   : > { %v4315_v8 = vpop.permute.xlu1 %4314  ;;  %4951 = vmatmul.mubr.msk.f32.vlgmr.msra.gmra.mxu0 %vm1888_vm11, %v4950_v63  ;;  %v4475_v9 = vpop.permute.xlu0 %4474  ;;  %5140 = vmatprep.mubr.msk.f32.mxu1 %vm5186_vm0, %v5185_v0 }
 0x471   : > { %5139 = vmatpush3.msra.mxu1 %v4315_v8  ;;  %v4317_v10 = vsel %vm1336_vm8, %v4313_v3, %v4315_v8  ;;  %4388 = vmatprep.mubr.f32.mxu0 %v5185_v0 }
 0x472   : > { %4354 = vmatprep.subr.mxu0 %v4317_v10  ;;  %5141 = vmatmul.mubr.msk.f32.vlgmr.msra.gmra.mxu1 %vm1888_vm11, %v4953_v6 }
 0x473   : > { %5143 = vmatprep.subr.mxu1 %v5185_v0  ;;  %4355 = vmatpush1.msra.mxu0 %v4316_v11 }
 0x474   : > { %5144 = vmatpush3.msra.mxu1 %v4475_v9  ;;  %v4473_v13 = vpop.permute.xlu1 %4472  ;;  %4954 = vmatmul.mubr.msk.f32.vlgmr.msra.gmra.mxu0 %vm1888_vm11, %v4953_v6  ;;  %v4633_v14 = vpop.permute.xlu0 %4632 }
 0x475   : > { %v4476_v15 = vsel %vm1505_vm9, %v5627_v42, %v4473_v13  ;;  %5145 = vmatprep.mubr.msk.f32.mxu1 %vm5186_vm0, %v5185_v0  ;;  %v4477_v17 = vsel %vm1505_vm9, %v4473_v13, %v4475_v9  ;;  %4548 = vmatprep.mubr.f32.mxu0 %v5185_v0 }
 0x476   : > { %4514 = vmatprep.subr.mxu0 %v4477_v17  ;;  %5146 = vmatmul.mubr.msk.f32.vlgmr.msra.gmra.mxu1 %vm1888_vm11, %v4956_v12 }
 0x477   : > { %4515 = vmatpush1.msra.mxu0 %v4476_v15  ;;  %5148 = vmatprep.subr.mxu1 %v5185_v0 }
 0x478   : > { %v4635_v19 = vpop.permute.xlu1 %4634  ;;  %4957 = vmatmul.mubr.msk.f32.vlgmr.msra.gmra.mxu0 %vm1888_vm11, %v4956_v12  ;;  %v4631_v20 = vpop.permute.xlu0 %4630  ;;  %5150 = vmatprep.mubr.msk.f32.mxu1 %vm5186_vm0, %v5185_v0  ;;  %vm4793_vm0 = vcmask 551936  }
 0x479   : > { %v4636_v21 = vsel %vm1674_vm10, %v4631_v20, %v4633_v14  ;;  %5149 = vmatpush3.msra.mxu1 %v4635_v19  ;;  %v4637_v22 = vsel %vm1674_vm10, %v4633_v14, %v4635_v19  ;;  %4708 = vmatprep.mubr.f32.mxu0 %v5185_v0 }
 0x47a   : > { %4674 = vmatprep.subr.mxu0 %v4637_v22  ;;  %5151 = vmatmul.mubr.msk.f32.vlgmr.msra.gmra.mxu1 %vm1888_vm11, %v4959_v18 }
 0x47b   : > { %4675 = vmatpush1.msra.mxu0 %v4636_v21 }
 0x47c   : > { %4960 = vmatmul.mubr.msk.f32.vlgmr.msra.gmra.mxu0 %vm1888_vm11, %v4959_v18 }
 0x485   : > { %v3352_v34 = vpop.permute.xlu1 %3351 }
 0x49c   : > { %v3427_v25 = vpop.f32.mrf.mxu0 }
 0x49d   : > { %v3502_v43 = vadd.f32 %v3427_v25, %v3352_v34 }
 0x49e   : > { %v3429_v28 = vpop.f32.mrf.mxu0 }
 0x49f   : > { %v3503_v44 = vadd.f32 %v3429_v28, %v3352_v34 }
 0x4a0   : > { %v3498_v23 = vpop.f32.mrf.mxu1 }
 0x4a1   : > { %v3504_v37 = vadd.f32 %v3498_v23, %v3352_v34 }
 0x4a2   : > { %v5112_v24 = vpop.f32.mrf.mxu1 }
 0x51a   : > { %v3661_v26 = vpop.f32.mrf.mxu1 }
 0x51b   : > { %v3667_v40 = vadd.f32 %v3661_v26, %v3504_v37 }
 0x51c   : > { %v5117_v27 = vpop.f32.mrf.mxu1 }
 0x520   : > { %v3590_v29 = vpop.f32.mrf.mxu0 }
 0x521   : > { %v3665_v48 = vadd.f32 %v3590_v29, %v3502_v43 }
 0x522   : > { %v3592_v30 = vpop.f32.mrf.mxu0  ;;  %v3821_v31 = vpop.f32.mrf.mxu1 }
 0x523   : > { %v3827_v45 = vadd.f32 %v3821_v31, %v3667_v40  ;;  %v3666_v49 = vadd.f32 %v3592_v30, %v3503_v44 }
 0x524   : > { %v3750_v32 = vpop.f32.mrf.mxu0  ;;  %v5122_v7 = vpop.f32.mrf.mxu1 }
 0x525   : > { %v3825_v53 = vadd.f32 %v3750_v32, %v3665_v48 }
 0x526   : > { %v3752_v33 = vpop.f32.mrf.mxu0  ;;  %v3981_v16 = vpop.f32.mrf.mxu1 }
 0x527   : > { %v3987_v50 = vadd.f32 %v3981_v16, %v3827_v45  ;;  %v3826_v54 = vadd.f32 %v3752_v33, %v3666_v49 }
 0x528   : > { %v3910_v0 = vpop.f32.mrf.mxu0  ;;  %v5127_v1 = vpop.f32.mrf.mxu1 }
 0x529   : > { %v3985_v58 = vadd.f32 %v3910_v0, %v3825_v53 }
 0x52a   : > { %v3912_v35 = vpop.f32.mrf.mxu0  ;;  %v4141_v36 = vpop.f32.mrf.mxu1 }
 0x52b   : > { %v4147_v55 = vadd.f32 %v4141_v36, %v3987_v50  ;;  %v3986_v59 = vadd.f32 %v3912_v35, %v3826_v54 }
 0x52c   : > { %v4070_v38 = vpop.f32.mrf.mxu0  ;;  %v5132_v39 = vpop.f32.mrf.mxu1 }
 0x52d   : > { %v4145_v63 = vadd.f32 %v4070_v38, %v3985_v58 }
 0x52e   : > { %v4072_v41 = vpop.f32.mrf.mxu0  ;;  %v4301_v42 = vpop.f32.mrf.mxu1 }
 0x52f   : > { %v4307_v60 = vadd.f32 %v4301_v42, %v4147_v55  ;;  %v4146_v2 = vadd.f32 %v4072_v41, %v3986_v59 }
 0x530   : > { %v4230_v46 = vpop.f32.mrf.mxu0  ;;  %v5137_v47 = vpop.f32.mrf.mxu1 }
 0x531   : > { %v4305_v6 = vadd.f32 %v4230_v46, %v4145_v63 }
 0x532   : > { %v4232_v51 = vpop.f32.mrf.mxu0  ;;  %v4461_v52 = vpop.f32.mrf.mxu1 }
 0x533   : > { %v4467_v3 = vadd.f32 %v4461_v52, %v4307_v60  ;;  %v4306_v8 = vadd.f32 %v4232_v51, %v4146_v2 }
 0x534   : > { %v4390_v56 = vpop.f32.mrf.mxu0  ;;  %v5142_v57 = vpop.f32.mrf.mxu1 }
 0x535   : > { %v4465_v12 = vadd.f32 %v4390_v56, %v4305_v6 }
 0x536   : > { %v4392_v61 = vpop.f32.mrf.mxu0  ;;  %v4621_v62 = vpop.f32.mrf.mxu1 }
 0x537   : > { %v4627_v9 = vadd.f32 %v4621_v62, %v4467_v3  ;;  %v4466_v13 = vadd.f32 %v4392_v61, %v4306_v8 }
 0x538   : > { %v4550_v4 = vpop.f32.mrf.mxu0  ;;  %v5147_v5 = vpop.f32.mrf.mxu1 }
 0x539   : > { %v4625_v18 = vadd.f32 %v4550_v4, %v4465_v12 }
 0x53a   : > { %v4552_v10 = vpop.f32.mrf.mxu0  ;;  %v4781_v11 = vpop.f32.mrf.mxu1 }
 0x53b   : > { %v4787_v14 = vadd.f32 %v4781_v11, %v4627_v9  ;;  %v4626_v19 = vadd.f32 %v4552_v10, %v4466_v13 }
 0x53c   : > { %v4710_v15 = vpop.f32.mrf.mxu0  ;;  %v5152_v17 = vpop.f32.mrf.mxu1 }
 0x53d   : > { %4794 = vst.msk [vmem:[%s305_s14 + $0x8] sm:$0xf] %vm4793_vm0, %v4787_v14  ;;  %v4785_v21 = vadd.f32 %v4710_v15, %v4625_v18 }
 0x53e   : > { %v4712_v20 = vpop.f32.mrf.mxu0 }
 0x53f   : > { %v4786_v22 = vadd.f32 %v4712_v20, %v4626_v19 }
 0x541   : > { %v4790_v23 = vcombine.low %v4785_v21, %v4786_v22 }
 0x543   : > { %4792 = vst [vmem:[%s305_s14] sm:$0xff] %v4790_v23 }
 0x544 PF: > { %s18_s27 = sadd.s32 1, %s5183_s27  }
 0x545   : > { %p15_p4 = scmp.ge.s32.totalorder %s18_s27, 4  }
 0x547   :  { %17 = sbr.rel (!%p15_p4) target bundleno = 1 (0x1), region = 106 }

</bundles_post_ra>
